<compile_context>
chip_gen: v7x
topology: tpu7x:2x2x1
jax: 0.10.0
libtpu: 0.0.40
codegen_flags: <defaults>
</compile_context>

<pallas_src>
import jax
import jax.numpy as jnp
from jax.experimental import pallas as pl
from jax.experimental.pallas import tpu as pltpu


def bottleneck1x1_kernel(x_ref,
                         w1_ref, b1_ref,
                         w2_ref, b2_ref,
                         w3_ref, b3_ref,
                         o_ref):
    # x tile: (tm, Cin) in the activation dtype (bf16 on the HBM side).
    x = x_ref[...]

    # conv1 (1x1, BN scale pre-folded into w1) -> bias -> relu
    h = jnp.dot(x, w1_ref[...], preferred_element_type=jnp.float32)
    h = jnp.maximum(h + b1_ref[...], 0.0)

    # conv2 (1x1, stride=1) -> bias -> relu
    h = jnp.dot(h.astype(w2_ref.dtype), w2_ref[...],
                preferred_element_type=jnp.float32)
    h = jnp.maximum(h + b2_ref[...], 0.0)

    # conv3 (1x1) -> bias
    h = jnp.dot(h.astype(w3_ref.dtype), w3_ref[...],
                preferred_element_type=jnp.float32)
    h = h + b3_ref[...]

    # identity residual (downsample is None) + final relu, in f32
    h = h + x.astype(jnp.float32)
    o_ref[...] = jnp.maximum(h, 0.0).astype(o_ref.dtype)


def _vmem_capacity_bytes():
    try:
        return pltpu.get_tpu_info().vmem_capacity_bytes  # 128 MiB v5e/v6e, 64 MiB v7x
    except Exception:
        return 64 * 1024 * 1024  # conservative fallback


def _choose_tm(M, cin, cout, planes, act_itemsize, w_itemsize):
    """Pick the largest M tile that fits a conservative VMEM budget."""
    budget = int(_vmem_capacity_bytes() * 0.4)  # headroom for compiler temps
    # Resident weights/biases (budget both pipeline buffers even though the
    # constant block index means they are only DMA'd once).
    w_bytes = 2 * (w_itemsize * (cin * planes + planes * planes + planes * cout)
                   + 4 * (2 * planes + cout))
    # Per-row bytes: double-buffered x and out tiles + f32 intermediates.
    per_row = 2 * act_itemsize * (cin + cout) + 4 * (cin + planes + cout)
    tm = (budget - w_bytes) // per_row
    tm = int(max(128, min(1024, tm)))     # 512-1024 rows hits ~85% HBM roofline
    # Never larger than the (sublane-padded) number of rows.
    m_pad = max(8, -(-M // 8) * 8)
    tm = min(tm, m_pad)
    return max(8, (tm // 8) * 8)


def bottleneck1x1_pallas(x, params, *, tm=None):
    """x: NHWC (N, H, W, C) or 2-D (M, C) activations (bf16 recommended)."""
    orig_shape = x.shape
    cin = orig_shape[-1]
    x2d = x.reshape(-1, cin)          # free view: channels-last, no transpose
    M = x2d.shape[0]

    w1, b1 = params["w1"], params["b1"]
    w2, b2 = params["w2"], params["b2"]
    w3, b3 = params["w3"], params["b3"]
    planes = w1.shape[1]
    cout = w3.shape[1]
    assert cout == cin, "identity residual requires inplanes == planes * expansion"

    if tm is None:
        tm = _choose_tm(M, cin, cout, planes,
                        x2d.dtype.itemsize, w1.dtype.itemsize)

    grid = (pl.cdiv(M, tm),)          # partial last tile handled by Pallas

    # Constant-index blocks: fetched once, resident across all grid steps.
    const = lambda arr: pl.BlockSpec(arr.shape, lambda i: (0, 0))

    vmem_cap = _vmem_capacity_bytes()
    vmem_limit = min(int(vmem_cap * 0.75), 100 * 1024 * 1024)

    flops = 2 * M * (cin * planes + planes * planes + planes * cout)
    bytes_accessed = (x2d.size * x2d.dtype.itemsize            # x in
                      + M * cout * x2d.dtype.itemsize          # out
                      + w1.dtype.itemsize * (cin * planes + planes * planes
                                             + planes * cout)
                      + 4 * (2 * planes + cout))               # biases (f32)

    out2d = pl.pallas_call(
        bottleneck1x1_kernel,
        out_shape=jax.ShapeDtypeStruct((M, cout), x2d.dtype),
        grid_spec=pltpu.PrefetchScalarGridSpec(
            num_scalar_prefetch=0,
            grid=grid,
            in_specs=[
                pl.BlockSpec((tm, cin), lambda i: (i, 0)),   # x tile (streamed)
                const(w1), const(b1),
                const(w2), const(b2),
                const(w3), const(b3),
            ],
            out_specs=pl.BlockSpec((tm, cout), lambda i: (i, 0)),
        ),
        compiler_params=pltpu.CompilerParams(
            dimension_semantics=("parallel",),     # megacore-shardable on v7x
            vmem_limit_bytes=vmem_limit),
        cost_estimate=pl.CostEstimate(flops=flops, transcendentals=0,
                                      bytes_accessed=bytes_accessed),
    )(x2d, w1, b1, w2, b2, w3, b3)

    return out2d.reshape(orig_shape[:-1] + (cout,))


def make_params(key, inplanes, planes, expansion=4, eps=1e-5,
                dtype=jnp.bfloat16):
    """Deterministic synthetic weights; BN folded (scale -> weights, bias kept)."""
    outplanes = planes * expansion
    ks = jax.random.split(key, 15)

    def bn_fold(kg, kb, km, kv, c):
        gamma = 1.0 + 0.1 * jax.random.normal(kg, (c,), jnp.float32)
        beta = 0.1 * jax.random.normal(kb, (c,), jnp.float32)
        mean = 0.1 * jax.random.normal(km, (c,), jnp.float32)
        var = jax.random.uniform(kv, (c,), jnp.float32, 0.5, 1.5)
        scale = gamma / jnp.sqrt(var + eps)
        bias = beta - mean * scale
        return scale, bias

    # PyTorch Conv2d 1x1 weight is (Cout, Cin, 1, 1); store transposed (Cin, Cout)
    # so every 1x1 conv is  y = x @ W.
    w1 = 0.1 * jax.random.normal(ks[0], (inplanes, planes), jnp.float32)
    w2 = 0.1 * jax.random.normal(ks[1], (planes, planes), jnp.float32)
    w3 = 0.1 * jax.random.normal(ks[2], (planes, outplanes), jnp.float32)
    s1, b1 = bn_fold(ks[3], ks[4], ks[5], ks[6], planes)
    s2, b2 = bn_fold(ks[7], ks[8], ks[9], ks[10], planes)
    s3, b3 = bn_fold(ks[11], ks[12], ks[13], ks[14], outplanes)

    # Fold BN scale into the conv weight columns; keep biases in f32.
    return dict(
        w1=(w1 * s1[None, :]).astype(dtype), b1=b1.reshape(1, planes),
        w2=(w2 * s2[None, :]).astype(dtype), b2=b2.reshape(1, planes),
        w3=(w3 * s3[None, :]).astype(dtype), b3=b3.reshape(1, outplanes),
    )


def bottleneck1x1_ref(x2d, p):
    """Pure-JAX reference mirroring the kernel's bf16-operand / f32-accumulate math."""
    h = jnp.dot(x2d, p["w1"], preferred_element_type=jnp.float32)
    h = jnp.maximum(h + p["b1"], 0.0)
    h = jnp.dot(h.astype(p["w2"].dtype), p["w2"],
                preferred_element_type=jnp.float32)
    h = jnp.maximum(h + p["b2"], 0.0)
    h = jnp.dot(h.astype(p["w3"].dtype), p["w3"],
                preferred_element_type=jnp.float32)
    h = h + p["b3"] + x2d.astype(jnp.float32)
    return jnp.maximum(h, 0.0)


if __name__ == "__main__":
    # Small shapes consistent with the module (inplanes = planes * expansion so
    # the identity residual is valid) and lane-dense in/out channels (128).
    N, H, W = 2, 16, 16
    planes = 32
    inplanes = planes * 4            # 128
    key = jax.random.PRNGKey(0)
    kx, kp = jax.random.split(key)

    # Channels-last activations end-to-end (semantically identical to the
    # module's NCHW input for 1x1 convs; avoids an extra HBM transpose pass).
    x_nhwc = jax.random.normal(kx, (N, H, W, inplanes),
                               jnp.float32).astype(jnp.bfloat16)
    params = make_params(kp, inplanes, planes)

    out_nhwc = bottleneck1x1_pallas(x_nhwc, params)
    out_nhwc = jax.block_until_ready(out_nhwc)
    assert out_nhwc.shape == (N, H, W, inplanes)

    out2d = out_nhwc.reshape(-1, inplanes).astype(jnp.float32)
    ref = bottleneck1x1_ref(x_nhwc.reshape(-1, inplanes), params)

    assert bool(jnp.all(jnp.isfinite(out2d)))
    max_err = float(jnp.max(jnp.abs(out2d - ref)))
    assert jnp.allclose(out2d, ref, atol=5e-2, rtol=5e-2), \
        f"mismatch vs reference, max abs err {max_err}"

    print("KERNEL_OK")
</pallas_src>

<mosaic_0001>
module attributes {stable_mosaic.version = 11 : i64} {
  func.func @bottleneck1x1_kernel(%arg0: i32, %arg1: memref<512x128xbf16, #tpu.memory_space<vmem>>, %arg2: memref<128x32xbf16, #tpu.memory_space<vmem>>, %arg3: memref<1x32xf32, #tpu.memory_space<vmem>>, %arg4: memref<32x32xbf16, #tpu.memory_space<vmem>>, %arg5: memref<1x32xf32, #tpu.memory_space<vmem>>, %arg6: memref<32x128xbf16, #tpu.memory_space<vmem>>, %arg7: memref<1x128xf32, #tpu.memory_space<vmem>>, %arg8: memref<512x128xbf16, #tpu.memory_space<vmem>>) attributes {dimension_semantics = [#tpu.dimension_semantics<parallel>], iteration_bounds = array<i64: 1>, scalar_prefetch = 0 : i64, scratch_operands = 0 : i64, tpu.core_type = #tpu.core_type<tc>, window_params = [{transform_indices = @transform_0, window_bounds = array<i64: 512, 128>}, {pipeline_mode = #tpu.pipeline_mode<synchronous>, transform_indices = @transform_1, window_bounds = array<i64: 128, 32>}, {pipeline_mode = #tpu.pipeline_mode<synchronous>, transform_indices = @transform_2, window_bounds = array<i64: 1, 32>}, {pipeline_mode = #tpu.pipeline_mode<synchronous>, transform_indices = @transform_3, window_bounds = array<i64: 32, 32>}, {pipeline_mode = #tpu.pipeline_mode<synchronous>, transform_indices = @transform_4, window_bounds = array<i64: 1, 32>}, {pipeline_mode = #tpu.pipeline_mode<synchronous>, transform_indices = @transform_5, window_bounds = array<i64: 32, 128>}, {pipeline_mode = #tpu.pipeline_mode<synchronous>, transform_indices = @transform_6, window_bounds = array<i64: 1, 128>}, {transform_indices = @transform_7, window_bounds = array<i64: 512, 128>}]} {
    %c0 = arith.constant 0 : index
    %c0_0 = arith.constant 0 : index
    %0 = vector.load %arg1[%c0, %c0_0] : memref<512x128xbf16, #tpu.memory_space<vmem>>, vector<512x128xbf16>
    %c0_1 = arith.constant 0 : index
    %c0_2 = arith.constant 0 : index
    %1 = vector.load %arg2[%c0_1, %c0_2] : memref<128x32xbf16, #tpu.memory_space<vmem>>, vector<128x32xbf16>
    %cst = arith.constant dense<0.000000e+00> : vector<512x32xf32>
    %2 = tpu.matmul %0, %1, %cst {dimension_numbers = #tpu.dot_dimension_numbers<[1], [0], [0], [1], [0, 0, 1, 1], [], []>} : vector<512x128xbf16>, vector<128x32xbf16>, vector<512x32xf32> -> vector<512x32xf32>
    %c0_3 = arith.constant 0 : index
    %c0_4 = arith.constant 0 : index
    %3 = vector.load %arg3[%c0_3, %c0_4] : memref<1x32xf32, #tpu.memory_space<vmem>>, vector<1x32xf32>
    %4 = vector.broadcast %3 : vector<1x32xf32> to vector<512x32xf32>
    %5 = arith.addf %2, %4 : vector<512x32xf32>
    %cst_5 = arith.constant 0.000000e+00 : f32
    %6 = vector.broadcast %cst_5 : f32 to vector<512x32xf32>
    %7 = arith.maximumf %5, %6 : vector<512x32xf32>
    %8 = arith.truncf %7 : vector<512x32xf32> to vector<512x32xbf16>
    %c0_6 = arith.constant 0 : index
    %c0_7 = arith.constant 0 : index
    %9 = vector.load %arg4[%c0_6, %c0_7] : memref<32x32xbf16, #tpu.memory_space<vmem>>, vector<32x32xbf16>
    %cst_8 = arith.constant dense<0.000000e+00> : vector<512x32xf32>
    %10 = tpu.matmul %8, %9, %cst_8 {dimension_numbers = #tpu.dot_dimension_numbers<[1], [0], [0], [1], [0, 0, 1, 1], [], []>} : vector<512x32xbf16>, vector<32x32xbf16>, vector<512x32xf32> -> vector<512x32xf32>
    %c0_9 = arith.constant 0 : index
    %c0_10 = arith.constant 0 : index
    %11 = vector.load %arg5[%c0_9, %c0_10] : memref<1x32xf32, #tpu.memory_space<vmem>>, vector<1x32xf32>
    %12 = vector.broadcast %11 : vector<1x32xf32> to vector<512x32xf32>
    %13 = arith.addf %10, %12 : vector<512x32xf32>
    %cst_11 = arith.constant 0.000000e+00 : f32
    %14 = vector.broadcast %cst_11 : f32 to vector<512x32xf32>
    %15 = arith.maximumf %13, %14 : vector<512x32xf32>
    %16 = arith.truncf %15 : vector<512x32xf32> to vector<512x32xbf16>
    %c0_12 = arith.constant 0 : index
    %c0_13 = arith.constant 0 : index
    %17 = vector.load %arg6[%c0_12, %c0_13] : memref<32x128xbf16, #tpu.memory_space<vmem>>, vector<32x128xbf16>
    %cst_14 = arith.constant dense<0.000000e+00> : vector<512x128xf32>
    %18 = tpu.matmul %16, %17, %cst_14 {dimension_numbers = #tpu.dot_dimension_numbers<[1], [0], [0], [1], [0, 0, 1, 1], [], []>} : vector<512x32xbf16>, vector<32x128xbf16>, vector<512x128xf32> -> vector<512x128xf32>
    %c0_15 = arith.constant 0 : index
    %c0_16 = arith.constant 0 : index
    %19 = vector.load %arg7[%c0_15, %c0_16] : memref<1x128xf32, #tpu.memory_space<vmem>>, vector<1x128xf32>
    %20 = vector.broadcast %19 : vector<1x128xf32> to vector<512x128xf32>
    %21 = arith.addf %18, %20 : vector<512x128xf32>
    %22 = arith.extf %0 : vector<512x128xbf16> to vector<512x128xf32>
    %23 = arith.addf %21, %22 : vector<512x128xf32>
    %cst_17 = arith.constant 0.000000e+00 : f32
    %24 = vector.broadcast %cst_17 : f32 to vector<512x128xf32>
    %25 = arith.maximumf %23, %24 : vector<512x128xf32>
    %26 = arith.truncf %25 : vector<512x128xf32> to vector<512x128xbf16>
    %c0_18 = arith.constant 0 : index
    %c0_19 = arith.constant 0 : index
    %27 = vector.load %arg8[%c0_18, %c0_19] : memref<512x128xbf16, #tpu.memory_space<vmem>>, vector<512x128xbf16>
    tpu.vector_store %arg8[%c0_18, %c0_19], %26 {strides = array<i32>} : memref<512x128xbf16, #tpu.memory_space<vmem>>, vector<512x128xbf16>,
    return
  }
  func.func @transform_0(%arg0: i32) -> (i32, i32) {
    %c0_i32 = arith.constant 0 : i32
    %c0_i32_0 = arith.constant 0 : i32
    return %arg0, %c0_i32 : i32, i32
  }
  func.func @transform_1(%arg0: i32) -> (i32, i32) {
    %c0_i32 = arith.constant 0 : i32
    %c0_i32_0 = arith.constant 0 : i32
    %c0_i32_1 = arith.constant 0 : i32
    return %c0_i32, %c0_i32_0 : i32, i32
  }
  func.func @transform_2(%arg0: i32) -> (i32, i32) {
    %c0_i32 = arith.constant 0 : i32
    %c0_i32_0 = arith.constant 0 : i32
    %c0_i32_1 = arith.constant 0 : i32
    return %c0_i32, %c0_i32_0 : i32, i32
  }
  func.func @transform_3(%arg0: i32) -> (i32, i32) {
    %c0_i32 = arith.constant 0 : i32
    %c0_i32_0 = arith.constant 0 : i32
    %c0_i32_1 = arith.constant 0 : i32
    return %c0_i32, %c0_i32_0 : i32, i32
  }
  func.func @transform_4(%arg0: i32) -> (i32, i32) {
    %c0_i32 = arith.constant 0 : i32
    %c0_i32_0 = arith.constant 0 : i32
    %c0_i32_1 = arith.constant 0 : i32
    return %c0_i32, %c0_i32_0 : i32, i32
  }
  func.func @transform_5(%arg0: i32) -> (i32, i32) {
    %c0_i32 = arith.constant 0 : i32
    %c0_i32_0 = arith.constant 0 : i32
    %c0_i32_1 = arith.constant 0 : i32
    return %c0_i32, %c0_i32_0 : i32, i32
  }
  func.func @transform_6(%arg0: i32) -> (i32, i32) {
    %c0_i32 = arith.constant 0 : i32
    %c0_i32_0 = arith.constant 0 : i32
    %c0_i32_1 = arith.constant 0 : i32
    return %c0_i32, %c0_i32_0 : i32, i32
  }
  func.func @transform_7(%arg0: i32) -> (i32, i32) {
    %c0_i32 = arith.constant 0 : i32
    %c0_i32_0 = arith.constant 0 : i32
    return %arg0, %c0_i32 : i32, i32
  }
}

</mosaic_0001>

<bundles_post_ra>
// kernel: tpu_custom_call.1
= control target key start
LH: loop header
LB: loop body
LE: loop exit
PB: predicated region body
PF: predicated region fallthrough
CT: control target
= control target key end

     0   :  { %12 = vsyncpa [#allocation3], 0  ;;  %s3499_s0 = inlined_call_operand.hbm [shape: bf16[512,128], index: 0, kind: input, shape index: {}]   ;;  %s3500_s1 = inlined_call_operand.vmem [shape: bf16[128,32], index: 1, kind: input, shape index: {}]   ;;  %s3501_s2 = inlined_call_operand.vmem [shape: f32[1,32], index: 2, kind: input, shape index: {}]   ;;  %s3502_s3 = inlined_call_operand.vmem [shape: bf16[32,32], index: 3, kind: input, shape index: {}]   ;;  %s3503_s4 = inlined_call_operand.vmem [shape: f32[1,32], index: 4, kind: input, shape index: {}]   ;;  %s3504_s5 = inlined_call_operand.vmem [shape: bf16[32,128], index: 5, kind: input, shape index: {}]   ;;  %s3505_s6 = inlined_call_operand.vmem [shape: f32[1,128], index: 6, kind: input, shape index: {}]   ;;  %s3506_s7 = inlined_call_operand.hbm [shape: bf16[512,128], index: 7, kind: output, shape index: {}]  }
   0x1   :  { %13 = vsyncpa [#allocation4], 0  ;;  %s3114_s24 = smov [#allocation2]   ;;  %s3066_s28 = scalar_lea.hbm %s3499_s0, 4096 }
   0x2   :  { %s19_s25 = sshll.u32 %s3114_s24, 4  ;;  %p3067_p0 = scmp.ne.s32.totalorder %s3499_s0, %s3066_s28  ;;  %s20_s25 = int_to_ptr.vmem [resolvable:$true] %s19_s25 }
   0x3   :  { %p3070_p1 = scmp.lt.u32.totalorder %s3066_s28, %s3499_s0 }
   0x5   :  { %p3072_p2 = pnand %p3070_p1, %p3067_p0 }
   0x7   :  { %3075 = shalt.err (!%p3072_p2)
}
   0x8   :  { %s3076_s10 = scalar_lea.vmem %s20_s25, 4096  ;;  %p3081_p4 = scmp.lt.s32.totalorder %s20_s25, %s20_s25 }
   0x9   :  { %p3077_p3 = scmp.ne.s32.totalorder %s20_s25, %s3076_s10  ;;  %p3082_p5 = scmp.lt.s32.totalorder %s3076_s10, %s3076_s10 }
   0xb   :  { %p3083_p6 = por %p3082_p5, %p3081_p4 }
   0xd   :  { %p3084_p7 = pnand %p3083_p6, %p3077_p3 }
   0xf   :  { %3087 = shalt.err (!%p3084_p7)
}
  0x10   :  { %s3115_s11 = smov 64   ;;  %s3116_s12 = smov 4  }
  0x11   :  { %25 = dma.hbm_to_vmem [thread:$0]  %s3499_s0, 4096, %s20_s25, [#allocation3], %s3115_s11, %s3115_s11, %s3116_s12  }
  0x12   :  { %3110 = dma.done.wait [#allocation3], 4096  }
  0x13   :  { %3111 = vsyncadd [#allocation3], 4294963200  ;;  %v2958_v0 = vld [vmem:[%s3500_s1] sm:$0xff]   ;;  %v2959_v1 = vld [vmem:[%s3500_s1 + $0x8] sm:$0xff]   ;;  %vm777_vm0 = vcmask 261120  }
  0x14   :  { %2734 = vmatprep.subr.bf16.mxu0 %v2958_v0  ;;  %v2960_v2 = vld [vmem:[%s3500_s1 + $0x10] sm:$0xff]   ;;  %v2961_v3 = vld [vmem:[%s3500_s1 + $0x18] sm:$0xff]   ;;  %v42_v4 = vld [vmem:[#allocation2] sm:$0xff]  }
  0x15   :  { %2735 = vmatpush3.bf16.msra.mxu0 %v2958_v0  ;;  %2750 = vmatprep.mubr.bf16.mxu0 %v42_v4  ;;  %v2962_v5 = vld [vmem:[%s3500_s1 + $0x20] sm:$0xff]   ;;  %v2963_v6 = vld [vmem:[%s3500_s1 + $0x28] sm:$0xff]   ;;  %v2964_v8 = vld [vmem:[%s3500_s1 + $0x30] sm:$0xff]  }
  0x16   :  { %2736 = vmatprep.subr.bf16.mxu0 %v2959_v1  ;;  %v2990_v7 = vld [vmem:[%s3502_s3] sm:$0xff]   ;;  %v2965_v9 = vld [vmem:[%s3500_s1 + $0x38] sm:$0xff]   ;;  %v2999_v10 = vld [vmem:[%s3502_s3 + $0x8] sm:$0xff]  }
  0x17   :  { %2950 = vmatprep.subr.bf16.mxu1 %v2990_v7  ;;  %v44_v11 = vld [vmem:[#allocation2 + $0x8] sm:$0xff]   ;;  %v46_v12 = vld [vmem:[#allocation2 + $0x10] sm:$0xff]   ;;  %v48_v13 = vld [vmem:[#allocation2 + $0x18] sm:$0xff]  }
  0x18   :  { %2952 = vmatpush3.bf16.msra.mxu1 %v2990_v7  ;;  %v50_v14 = vld [vmem:[#allocation2 + $0x20] sm:$0xff]   ;;  %v52_v15 = vld [vmem:[#allocation2 + $0x28] sm:$0xff]   ;;  %v54_v16 = vld [vmem:[#allocation2 + $0x30] sm:$0xff]  }
  0x19   :  { %2737 = vmatpush3.bf16.msra.mxu0 %v2959_v1  ;;  %2951 = vmatprep.subr.bf16.mxu1 %v2999_v10  ;;  %v56_v17 = vld [vmem:[#allocation2 + $0x38] sm:$0xff]   ;;  %v58_v18 = vld [vmem:[#allocation2 + $0x40] sm:$0xff]   ;;  %v60_v19 = vld [vmem:[#allocation2 + $0x48] sm:$0xff]  }
  0x1a   :  { %2738 = vmatprep.subr.bf16.mxu0 %v2960_v2  ;;  %v62_v20 = vld [vmem:[#allocation2 + $0x50] sm:$0xff]   ;;  %v64_v21 = vld [vmem:[#allocation2 + $0x58] sm:$0xff]   ;;  %v66_v22 = vld [vmem:[#allocation2 + $0x60] sm:$0xff]  }
  0x1b   :  { %v68_v23 = vld [vmem:[#allocation2 + $0x68] sm:$0xff]   ;;  %v70_v24 = vld [vmem:[#allocation2 + $0x70] sm:$0xff]   ;;  %v72_v25 = vld [vmem:[#allocation2 + $0x78] sm:$0xff]  }
  0x1c   :  { %2953 = vmatpush3.bf16.msra.mxu1 %v2999_v10  ;;  %v74_v26 = vld [vmem:[#allocation2 + $0x80] sm:$0xff]   ;;  %v76_v27 = vld [vmem:[#allocation2 + $0x88] sm:$0xff]   ;;  %v78_v28 = vld [vmem:[#allocation2 + $0x90] sm:$0xff]  }
  0x1d   :  { %2739 = vmatpush3.bf16.msra.mxu0 %v2960_v2  ;;  %v80_v29 = vld [vmem:[#allocation2 + $0x98] sm:$0xff]   ;;  %v82_v30 = vld [vmem:[#allocation2 + $0xa0] sm:$0xff]   ;;  %v84_v31 = vld [vmem:[#allocation2 + $0xa8] sm:$0xff]  }
  0x1e   :  { %2740 = vmatprep.subr.bf16.mxu0 %v2961_v3  ;;  %v86_v32 = vld [vmem:[#allocation2 + $0xb0] sm:$0xff]   ;;  %v88_v33 = vld [vmem:[#allocation2 + $0xb8] sm:$0xff]   ;;  %v90_v34 = vld [vmem:[#allocation2 + $0xc0] sm:$0xff]  }
  0x1f   :  { %v92_v35 = vld [vmem:[#allocation2 + $0xc8] sm:$0xff]   ;;  %v94_v36 = vld [vmem:[#allocation2 + $0xd0] sm:$0xff]   ;;  %v96_v37 = vld [vmem:[#allocation2 + $0xd8] sm:$0xff]  }
  0x20   :  { %v98_v38 = vld [vmem:[#allocation2 + $0xe0] sm:$0xff]   ;;  %v100_v39 = vld [vmem:[#allocation2 + $0xe8] sm:$0xff]   ;;  %v102_v40 = vld [vmem:[#allocation2 + $0xf0] sm:$0xff]  }
  0x21   :  { %2741 = vmatpush3.bf16.msra.mxu0 %v2961_v3  ;;  %v104_v41 = vld [vmem:[#allocation2 + $0xf8] sm:$0xff]   ;;  %v3206_v42 = vld [vmem:[%s3501_s2] ss:$0 sm:$0xff] }
  0x22   :  { %2742 = vmatprep.subr.bf16.mxu0 %v2962_v5  ;;  %v3214_v50 = vld [vmem:[%s3504_s5] sm:$0xff]  }
  0x23   :  { %2882 = vmatprep.subr.bf16.mxu1 %v3214_v50 }
  0x25   :  { %2743 = vmatpush3.bf16.msra.mxu0 %v2962_v5 }
  0x26   :  { %2744 = vmatprep.subr.bf16.mxu0 %v2963_v6 }
  0x29   :  { %2745 = vmatpush3.bf16.msra.mxu0 %v2963_v6 }
  0x2a   :  { %2746 = vmatprep.subr.bf16.mxu0 %v2964_v8 }
  0x2d   :  { %2747 = vmatpush3.bf16.msra.mxu0 %v2964_v8 }
  0x2e   :  { %2748 = vmatprep.subr.bf16.mxu0 %v2965_v9 }
  0x31   :  { %2749 = vmatpush3.bf16.msra.mxu0 %v2965_v9 }
  0x32   :  { %2814 = vmatprep.subr.bf16.mxu0 %v2990_v7 }
  0x34   :  { %2751 = vmatmul.mubr.bf16.vlgmr.msra.gmra.mrb[0].mxu0 %v44_v11 }
  0x35   :  { %2754 = vmatprep.mubr.bf16.mxu0 %v46_v12  ;;  %2815 = vmatpush3.bf16.msra.mxu0 %v2990_v7 }
  0x36   :  { %2816 = vmatprep.subr.bf16.mxu0 %v2999_v10 }
  0x39   :  { %2817 = vmatpush3.bf16.msra.mxu0 %v2999_v10 }
  0x3c   :  { %2755 = vmatmul.mubr.bf16.gmra.mrb[4].mxu0 %v48_v13 }
  0x3d   :  { %2758 = vmatprep.mubr.bf16.mxu0 %v50_v14 }
  0x44   :  { %2759 = vmatmul.mubr.bf16.gmra.mrb[8].mxu0 %v52_v15 }
  0x45   :  { %2762 = vmatprep.mubr.bf16.mxu0 %v54_v16 }
  0x4c   :  { %2763 = vmatmul.mubr.bf16.gmra.mrb[12].mxu0 %v56_v17 }
  0x4d   :  { %2766 = vmatprep.mubr.bf16.mxu0 %v58_v18 }
  0x54   :  { %2767 = vmatmul.mubr.bf16.gmra.mrb[16].mxu0 %v60_v19 }
  0x55   :  { %2770 = vmatprep.mubr.bf16.mxu0 %v62_v20 }
  0x5c   :  { %2771 = vmatmul.mubr.bf16.gmra.mrb[20].mxu0 %v64_v21 }
  0x5d   :  { %2774 = vmatprep.mubr.bf16.mxu0 %v66_v22 }
  0x64   :  { %2775 = vmatmul.mubr.bf16.gmra.mrb[24].mxu0 %v68_v23 }
  0x65   :  { %2778 = vmatprep.mubr.bf16.mxu0 %v70_v24 }
  0x6c   :  { %2779 = vmatmul.mubr.bf16.gmra.mrb[28].mxu0 %v72_v25 }
  0x6d   :  { %2782 = vmatprep.mubr.bf16.mxu0 %v74_v26 }
  0x74   :  { %2783 = vmatmul.mubr.bf16.gmra.mrb[32].mxu0 %v76_v27 }
  0x75   :  { %2786 = vmatprep.mubr.bf16.mxu0 %v78_v28 }
  0x7c   :  { %2787 = vmatmul.mubr.bf16.gmra.mrb[36].mxu0 %v80_v29 }
  0x7d   :  { %2790 = vmatprep.mubr.bf16.mxu0 %v82_v30 }
  0x84   :  { %2791 = vmatmul.mubr.bf16.gmra.mrb[40].mxu0 %v84_v31 }
  0x85   :  { %2794 = vmatprep.mubr.bf16.mxu0 %v86_v32 }
  0x8c   :  { %2795 = vmatmul.mubr.bf16.gmra.mrb[44].mxu0 %v88_v33 }
  0x8d   :  { %2798 = vmatprep.mubr.bf16.mxu0 %v90_v34 }
  0x94   :  { %2799 = vmatmul.mubr.bf16.gmra.mrb[48].mxu0 %v92_v35 }
  0x95   :  { %2802 = vmatprep.mubr.bf16.mxu0 %v94_v36 }
  0x9c   :  { %2803 = vmatmul.mubr.bf16.gmra.mrb[52].mxu0 %v96_v37 }
  0x9d   :  { %2806 = vmatprep.mubr.bf16.mxu0 %v98_v38 }
  0xa4   :  { %2807 = vmatmul.mubr.bf16.gmra.mrb[56].mxu0 %v100_v39 }
  0xa5   :  { %2810 = vmatprep.mubr.bf16.mxu0 %v102_v40 }
  0xac   :  { %2811 = vmatmul.mubr.bf16.gmra.mrb[60].mxu0 %v104_v41 }
 0x107   :  { %v2752_v43 = vpop.f32.mrb[0].mxu0 }
 0x108   :  { %v412_v44 = vadd.f32 %v2752_v43, %v3206_v42  ;;  %v403_v45 = vpop.f32.mrb[1].mxu0 }
 0x109   :  { %v404_v46 = vadd.f32 %v3206_v42, %v403_v45  ;;  %v2753_v47 = vpop.f32.mrb[2].mxu0 }
 0x10a   :  { %v415_v48 = vadd.f32 %v2753_v47, %v3206_v42  ;;  %v406_v49 = vpop.f32.mrb[3].mxu0  ;;  %v660_v52 = vmax.f32 %v412_v44, 0.0 }
 0x10b   :  { %v407_v51 = vadd.f32 %v3206_v42, %v406_v49  ;;  %v658_v54 = vmax.f32 %v404_v46, 0.0 }
 0x10c   :  { %v661_v53 = vmax.f32 %v415_v48, 0.0 }
 0x10d   :  { %v659_v55 = vmax.f32 %v407_v51, 0.0 }
 0x10e   :  { %v723_v56 = vpack.c.bf16 %v661_v53, %v660_v52 }
 0x10f   :  { %v722_v57 = vpack.c.bf16 %v659_v55, %v658_v54  ;;  %v2756_v58 = vpop.f32.mrb[4].mxu0 }
 0x110   :  { %v428_v59 = vadd.f32 %v2756_v58, %v3206_v42  ;;  %v419_v60 = vpop.f32.mrb[5].mxu0 }
 0x111   :  { %v420_v61 = vadd.f32 %v3206_v42, %v419_v60  ;;  %v2757_v62 = vpop.f32.mrb[6].mxu0  ;;  %2818 = vmatprep.mubr.msk.bf16.mxu0 %vm777_vm0, %v722_v57 }
 0x112   :  { %v431_v63 = vadd.f32 %v2757_v62, %v3206_v42  ;;  %v422_v0 = vpop.f32.mrb[7].mxu0  ;;  %2819 = vmatmul.mubr.msk.bf16.vlgmr.msra.gmra.mrb[64].mxu0 %vm777_vm0, %v723_v56  ;;  %v664_v2 = vmax.f32 %v428_v59, 0.0 }
 0x113   :  { %v423_v1 = vadd.f32 %v3206_v42, %v422_v0  ;;  %v662_v4 = vmax.f32 %v420_v61, 0.0 }
 0x114   :  { %v665_v3 = vmax.f32 %v431_v63, 0.0 }
 0x115   :  { %v663_v5 = vmax.f32 %v423_v1, 0.0 }
 0x116   :  { %v725_v6 = vpack.c.bf16 %v665_v3, %v664_v2 }
 0x117   :  { %v724_v7 = vpack.c.bf16 %v663_v5, %v662_v4  ;;  %v2760_v8 = vpop.f32.mrb[8].mxu0 }
 0x118   :  { %v444_v9 = vadd.f32 %v2760_v8, %v3206_v42  ;;  %v435_v10 = vpop.f32.mrb[9].mxu0 }
 0x119   :  { %v436_v11 = vadd.f32 %v3206_v42, %v435_v10  ;;  %v2761_v12 = vpop.f32.mrb[10].mxu0  ;;  %2822 = vmatprep.mubr.msk.bf16.mxu0 %vm777_vm0, %v724_v7 }
 0x11a   :  { %v447_v13 = vadd.f32 %v2761_v12, %v3206_v42  ;;  %v438_v14 = vpop.f32.mrb[11].mxu0  ;;  %2823 = vmatmul.mubr.msk.bf16.gmra.mrb[68].mxu0 %vm777_vm0, %v725_v6  ;;  %v668_v16 = vmax.f32 %v444_v9, 0.0 }
 0x11b   :  { %v439_v15 = vadd.f32 %v3206_v42, %v438_v14  ;;  %v666_v18 = vmax.f32 %v436_v11, 0.0 }
 0x11c   :  { %v669_v17 = vmax.f32 %v447_v13, 0.0 }
 0x11d   :  { %v667_v19 = vmax.f32 %v439_v15, 0.0 }
 0x11e   :  { %v727_v20 = vpack.c.bf16 %v669_v17, %v668_v16 }
 0x11f   :  { %v726_v21 = vpack.c.bf16 %v667_v19, %v666_v18  ;;  %v2764_v22 = vpop.f32.mrb[12].mxu0  ;;  %v3001_v19 = vld [vmem:[%s3504_s5 + $0x8] sm:$0xff]  }
 0x120   :  { %v460_v23 = vadd.f32 %v2764_v22, %v3206_v42  ;;  %v451_v24 = vpop.f32.mrb[13].mxu0 }
 0x121   :  { %v452_v25 = vadd.f32 %v3206_v42, %v451_v24  ;;  %v2765_v26 = vpop.f32.mrb[14].mxu0  ;;  %2826 = vmatprep.mubr.msk.bf16.mxu0 %vm777_vm0, %v726_v21 }
 0x122   :  { %v463_v27 = vadd.f32 %v2765_v26, %v3206_v42  ;;  %v454_v28 = vpop.f32.mrb[15].mxu0  ;;  %2827 = vmatmul.mubr.msk.bf16.gmra.mrb[72].mxu0 %vm777_vm0, %v727_v20  ;;  %v672_v30 = vmax.f32 %v460_v23, 0.0 }
 0x123   :  { %v455_v29 = vadd.f32 %v3206_v42, %v454_v28  ;;  %v670_v32 = vmax.f32 %v452_v25, 0.0 }
 0x124   :  { %v673_v31 = vmax.f32 %v463_v27, 0.0 }
 0x125   :  { %v671_v33 = vmax.f32 %v455_v29, 0.0 }
 0x126   :  { %v729_v34 = vpack.c.bf16 %v673_v31, %v672_v30 }
 0x127   :  { %v728_v35 = vpack.c.bf16 %v671_v33, %v670_v32  ;;  %v2768_v36 = vpop.f32.mrb[16].mxu0 }
 0x128   :  { %v476_v37 = vadd.f32 %v2768_v36, %v3206_v42  ;;  %v467_v38 = vpop.f32.mrb[17].mxu0 }
 0x129   :  { %v468_v39 = vadd.f32 %v3206_v42, %v467_v38  ;;  %v2769_v40 = vpop.f32.mrb[18].mxu0  ;;  %2830 = vmatprep.mubr.msk.bf16.mxu0 %vm777_vm0, %v728_v35 }
 0x12a   :  { %v479_v41 = vadd.f32 %v2769_v40, %v3206_v42  ;;  %v470_v43 = vpop.f32.mrb[19].mxu0  ;;  %2831 = vmatmul.mubr.msk.bf16.gmra.mrb[76].mxu0 %vm777_vm0, %v729_v34  ;;  %v676_v45 = vmax.f32 %v476_v37, 0.0 }
 0x12b   :  { %v471_v44 = vadd.f32 %v3206_v42, %v470_v43  ;;  %v674_v47 = vmax.f32 %v468_v39, 0.0 }
 0x12c   :  { %v677_v46 = vmax.f32 %v479_v41, 0.0 }
 0x12d   :  { %v675_v48 = vmax.f32 %v471_v44, 0.0 }
 0x12e   :  { %v731_v49 = vpack.c.bf16 %v677_v46, %v676_v45 }
 0x12f   :  { %v730_v51 = vpack.c.bf16 %v675_v48, %v674_v47  ;;  %v2772_v52 = vpop.f32.mrb[20].mxu0 }
 0x130   :  { %v492_v53 = vadd.f32 %v2772_v52, %v3206_v42  ;;  %v483_v54 = vpop.f32.mrb[21].mxu0 }
 0x131   :  { %v484_v55 = vadd.f32 %v3206_v42, %v483_v54  ;;  %v2773_v56 = vpop.f32.mrb[22].mxu0  ;;  %2834 = vmatprep.mubr.msk.bf16.mxu0 %vm777_vm0, %v730_v51 }
 0x132   :  { %v495_v57 = vadd.f32 %v2773_v56, %v3206_v42  ;;  %v486_v58 = vpop.f32.mrb[23].mxu0  ;;  %2835 = vmatmul.mubr.msk.bf16.gmra.mrb[80].mxu0 %vm777_vm0, %v731_v49  ;;  %v680_v60 = vmax.f32 %v492_v53, 0.0 }
 0x133   :  { %v487_v59 = vadd.f32 %v3206_v42, %v486_v58  ;;  %v678_v62 = vmax.f32 %v484_v55, 0.0 }
 0x134   :  { %v681_v61 = vmax.f32 %v495_v57, 0.0 }
 0x135   :  { %v679_v63 = vmax.f32 %v487_v59, 0.0 }
 0x136   :  { %v733_v0 = vpack.c.bf16 %v681_v61, %v680_v60 }
 0x137   :  { %v732_v1 = vpack.c.bf16 %v679_v63, %v678_v62  ;;  %v2776_v2 = vpop.f32.mrb[24].mxu0 }
 0x138   :  { %v508_v3 = vadd.f32 %v2776_v2, %v3206_v42  ;;  %v499_v4 = vpop.f32.mrb[25].mxu0 }
 0x139   :  { %v500_v5 = vadd.f32 %v3206_v42, %v499_v4  ;;  %v2777_v6 = vpop.f32.mrb[26].mxu0  ;;  %2838 = vmatprep.mubr.msk.bf16.mxu0 %vm777_vm0, %v732_v1 }
 0x13a   :  { %v511_v7 = vadd.f32 %v2777_v6, %v3206_v42  ;;  %v502_v8 = vpop.f32.mrb[27].mxu0  ;;  %2839 = vmatmul.mubr.msk.bf16.gmra.mrb[84].mxu0 %vm777_vm0, %v733_v0  ;;  %v684_v10 = vmax.f32 %v508_v3, 0.0 }
 0x13b   :  { %v503_v9 = vadd.f32 %v3206_v42, %v502_v8  ;;  %v682_v12 = vmax.f32 %v500_v5, 0.0 }
 0x13c   :  { %v685_v11 = vmax.f32 %v511_v7, 0.0 }
 0x13d   :  { %v683_v13 = vmax.f32 %v503_v9, 0.0 }
 0x13e   :  { %v735_v14 = vpack.c.bf16 %v685_v11, %v684_v10 }
 0x13f   :  { %v2780_v15 = vpop.f32.mrb[28].mxu0  ;;  %v734_v16 = vpack.c.bf16 %v683_v13, %v682_v12 }
 0x140   :  { %v524_v17 = vadd.f32 %v2780_v15, %v3206_v42  ;;  %v515_v18 = vpop.f32.mrb[29].mxu0 }
 0x141   :  { %v516_v20 = vadd.f32 %v3206_v42, %v515_v18  ;;  %v2781_v21 = vpop.f32.mrb[30].mxu0  ;;  %2842 = vmatprep.mubr.msk.bf16.mxu1 %vm777_vm0, %v734_v16 }
 0x142   :  { %v527_v22 = vadd.f32 %v2781_v21, %v3206_v42  ;;  %v518_v23 = vpop.f32.mrb[31].mxu0  ;;  %2843 = vmatmul.mubr.msk.bf16.vlgmr.msra.gmra.mrb[0].mxu1 %vm777_vm0, %v735_v14  ;;  %v688_v25 = vmax.f32 %v524_v17, 0.0 }
 0x143   :  { %v519_v24 = vadd.f32 %v3206_v42, %v518_v23  ;;  %2883 = vmatpush3.bf16.msra.mxu1 %v3214_v50  ;;  %v686_v27 = vmax.f32 %v516_v20, 0.0 }
 0x144   :  { %v689_v26 = vmax.f32 %v527_v22, 0.0  ;;  %2884 = vmatprep.subr.bf16.mxu1 %v3001_v19 }
 0x145   :  { %v687_v28 = vmax.f32 %v519_v24, 0.0 }
 0x146   :  { %v737_v29 = vpack.c.bf16 %v689_v26, %v688_v25 }
 0x147   :  { %v736_v30 = vpack.c.bf16 %v687_v28, %v686_v27  ;;  %v2784_v31 = vpop.f32.mrb[32].mxu0  ;;  %2885 = vmatpush3.bf16.msra.mxu1 %v3001_v19 }
 0x148   :  { %v540_v32 = vadd.f32 %v2784_v31, %v3206_v42  ;;  %v531_v33 = vpop.f32.mrb[33].mxu0 }
 0x149   :  { %v532_v34 = vadd.f32 %v3206_v42, %v531_v33  ;;  %v2785_v35 = vpop.f32.mrb[34].mxu0  ;;  %2846 = vmatprep.mubr.msk.bf16.mxu1 %vm777_vm0, %v736_v30 }
 0x14a   :  { %v543_v36 = vadd.f32 %v2785_v35, %v3206_v42  ;;  %v534_v50 = vpop.f32.mrb[35].mxu0  ;;  %2847 = vmatmul.mubr.msk.bf16.gmra.mrb[4].mxu1 %vm777_vm0, %v737_v29  ;;  %v692_v38 = vmax.f32 %v540_v32, 0.0 }
 0x14b   :  { %v535_v37 = vadd.f32 %v3206_v42, %v534_v50  ;;  %v690_v40 = vmax.f32 %v532_v34, 0.0 }
 0x14c   :  { %v693_v39 = vmax.f32 %v543_v36, 0.0 }
 0x14d   :  { %v691_v41 = vmax.f32 %v535_v37, 0.0 }
 0x14e   :  { %v739_v43 = vpack.c.bf16 %v693_v39, %v692_v38 }
 0x14f   :  { %v738_v44 = vpack.c.bf16 %v691_v41, %v690_v40  ;;  %v2788_v45 = vpop.f32.mrb[36].mxu0 }
 0x150   :  { %v556_v46 = vadd.f32 %v2788_v45, %v3206_v42  ;;  %v547_v47 = vpop.f32.mrb[37].mxu0 }
 0x151   :  { %v548_v48 = vadd.f32 %v3206_v42, %v547_v47  ;;  %v2789_v49 = vpop.f32.mrb[38].mxu0  ;;  %2850 = vmatprep.mubr.msk.bf16.mxu1 %vm777_vm0, %v738_v44 }
 0x152   :  { %v559_v51 = vadd.f32 %v2789_v49, %v3206_v42  ;;  %v550_v52 = vpop.f32.mrb[39].mxu0  ;;  %2851 = vmatmul.mubr.msk.bf16.gmra.mrb[8].mxu1 %vm777_vm0, %v739_v43  ;;  %v696_v54 = vmax.f32 %v556_v46, 0.0 }
 0x153   :  { %v551_v53 = vadd.f32 %v3206_v42, %v550_v52  ;;  %v694_v56 = vmax.f32 %v548_v48, 0.0 }
 0x154   :  { %v697_v55 = vmax.f32 %v559_v51, 0.0 }
 0x155   :  { %v695_v57 = vmax.f32 %v551_v53, 0.0 }
 0x156   :  { %v741_v58 = vpack.c.bf16 %v697_v55, %v696_v54 }
 0x157   :  { %v740_v59 = vpack.c.bf16 %v695_v57, %v694_v56  ;;  %v2792_v60 = vpop.f32.mrb[40].mxu0 }
 0x158   :  { %v572_v61 = vadd.f32 %v2792_v60, %v3206_v42  ;;  %v563_v62 = vpop.f32.mrb[41].mxu0 }
 0x159   :  { %v564_v63 = vadd.f32 %v3206_v42, %v563_v62  ;;  %v2793_v0 = vpop.f32.mrb[42].mxu0  ;;  %2854 = vmatprep.mubr.msk.bf16.mxu1 %vm777_vm0, %v740_v59 }
 0x15a   :  { %v575_v1 = vadd.f32 %v2793_v0, %v3206_v42  ;;  %v566_v2 = vpop.f32.mrb[43].mxu0  ;;  %2855 = vmatmul.mubr.msk.bf16.gmra.mrb[12].mxu1 %vm777_vm0, %v741_v58  ;;  %v700_v4 = vmax.f32 %v572_v61, 0.0 }
 0x15b   :  { %v567_v3 = vadd.f32 %v3206_v42, %v566_v2  ;;  %v698_v6 = vmax.f32 %v564_v63, 0.0 }
 0x15c   :  { %v701_v5 = vmax.f32 %v575_v1, 0.0 }
 0x15d   :  { %v699_v7 = vmax.f32 %v567_v3, 0.0 }
 0x15e   :  { %v743_v8 = vpack.c.bf16 %v701_v5, %v700_v4 }
 0x15f   :  { %v742_v9 = vpack.c.bf16 %v699_v7, %v698_v6  ;;  %v2796_v10 = vpop.f32.mrb[44].mxu0 }
 0x160   :  { %v588_v11 = vadd.f32 %v2796_v10, %v3206_v42  ;;  %v579_v12 = vpop.f32.mrb[45].mxu0 }
 0x161   :  { %v580_v13 = vadd.f32 %v3206_v42, %v579_v12  ;;  %v2797_v14 = vpop.f32.mrb[46].mxu0  ;;  %2858 = vmatprep.mubr.msk.bf16.mxu1 %vm777_vm0, %v742_v9 }
 0x162   :  { %v591_v15 = vadd.f32 %v2797_v14, %v3206_v42  ;;  %v582_v16 = vpop.f32.mrb[47].mxu0  ;;  %2859 = vmatmul.mubr.msk.bf16.gmra.mrb[16].mxu1 %vm777_vm0, %v743_v8  ;;  %v704_v18 = vmax.f32 %v588_v11, 0.0 }
 0x163   :  { %v583_v17 = vadd.f32 %v3206_v42, %v582_v16  ;;  %v702_v20 = vmax.f32 %v580_v13, 0.0 }
 0x164   :  { %v705_v19 = vmax.f32 %v591_v15, 0.0 }
 0x165   :  { %v703_v21 = vmax.f32 %v583_v17, 0.0  ;;  %v3317_v17 = vld [vmem:[%s3503_s4] ss:$0 sm:$0xff] }
 0x166   :  { %v745_v22 = vpack.c.bf16 %v705_v19, %v704_v18 }
 0x167   :  { %v744_v23 = vpack.c.bf16 %v703_v21, %v702_v20  ;;  %v2800_v24 = vpop.f32.mrb[48].mxu0 }
 0x168   :  { %v604_v25 = vadd.f32 %v2800_v24, %v3206_v42  ;;  %v595_v26 = vpop.f32.mrb[49].mxu0 }
 0x169   :  { %v596_v27 = vadd.f32 %v3206_v42, %v595_v26  ;;  %v2801_v28 = vpop.f32.mrb[50].mxu0  ;;  %2862 = vmatprep.mubr.msk.bf16.mxu1 %vm777_vm0, %v744_v23 }
 0x16a   :  { %v607_v29 = vadd.f32 %v2801_v28, %v3206_v42  ;;  %v598_v30 = vpop.f32.mrb[51].mxu0  ;;  %2863 = vmatmul.mubr.msk.bf16.gmra.mrb[20].mxu1 %vm777_vm0, %v745_v22  ;;  %v708_v32 = vmax.f32 %v604_v25, 0.0 }
 0x16b   :  { %v599_v31 = vadd.f32 %v3206_v42, %v598_v30  ;;  %v706_v34 = vmax.f32 %v596_v27, 0.0 }
 0x16c   :  { %v709_v33 = vmax.f32 %v607_v29, 0.0 }
 0x16d   :  { %v707_v35 = vmax.f32 %v599_v31, 0.0 }
 0x16e   :  { %v747_v36 = vpack.c.bf16 %v709_v33, %v708_v32 }
 0x16f   :  { %v746_v50 = vpack.c.bf16 %v707_v35, %v706_v34  ;;  %v2804_v37 = vpop.f32.mrb[52].mxu0 }
 0x170   :  { %v620_v38 = vadd.f32 %v2804_v37, %v3206_v42  ;;  %v611_v39 = vpop.f32.mrb[53].mxu0 }
 0x171   :  { %v612_v40 = vadd.f32 %v3206_v42, %v611_v39  ;;  %v2805_v41 = vpop.f32.mrb[54].mxu0  ;;  %2866 = vmatprep.mubr.msk.bf16.mxu1 %vm777_vm0, %v746_v50 }
 0x172   :  { %v623_v43 = vadd.f32 %v2805_v41, %v3206_v42  ;;  %v614_v44 = vpop.f32.mrb[55].mxu0  ;;  %2867 = vmatmul.mubr.msk.bf16.gmra.mrb[24].mxu1 %vm777_vm0, %v747_v36  ;;  %v712_v46 = vmax.f32 %v620_v38, 0.0 }
 0x173   :  { %v615_v45 = vadd.f32 %v3206_v42, %v614_v44  ;;  %v710_v48 = vmax.f32 %v612_v40, 0.0 }
 0x174   :  { %v713_v47 = vmax.f32 %v623_v43, 0.0 }
 0x175   :  { %v711_v49 = vmax.f32 %v615_v45, 0.0 }
 0x176   :  { %v749_v51 = vpack.c.bf16 %v713_v47, %v712_v46 }
 0x177   :  { %v748_v52 = vpack.c.bf16 %v711_v49, %v710_v48  ;;  %v2808_v53 = vpop.f32.mrb[56].mxu0 }
 0x178   :  { %v636_v54 = vadd.f32 %v2808_v53, %v3206_v42  ;;  %v627_v55 = vpop.f32.mrb[57].mxu0 }
 0x179   :  { %v628_v56 = vadd.f32 %v3206_v42, %v627_v55  ;;  %v2809_v57 = vpop.f32.mrb[58].mxu0  ;;  %2870 = vmatprep.mubr.msk.bf16.mxu1 %vm777_vm0, %v748_v52 }
 0x17a   :  { %v639_v58 = vadd.f32 %v2809_v57, %v3206_v42  ;;  %v630_v59 = vpop.f32.mrb[59].mxu0  ;;  %2871 = vmatmul.mubr.msk.bf16.gmra.mrb[28].mxu1 %vm777_vm0, %v749_v51  ;;  %v716_v61 = vmax.f32 %v636_v54, 0.0 }
 0x17b   :  { %v631_v60 = vadd.f32 %v3206_v42, %v630_v59  ;;  %v714_v63 = vmax.f32 %v628_v56, 0.0 }
 0x17c   :  { %v717_v62 = vmax.f32 %v639_v58, 0.0 }
 0x17d   :  { %v715_v0 = vmax.f32 %v631_v60, 0.0 }
 0x17e   :  { %v751_v1 = vpack.c.bf16 %v717_v62, %v716_v61 }
 0x17f   :  { %v750_v2 = vpack.c.bf16 %v715_v0, %v714_v63  ;;  %v2812_v3 = vpop.f32.mrb[60].mxu0 }
 0x180   :  { %v652_v4 = vadd.f32 %v2812_v3, %v3206_v42  ;;  %v643_v5 = vpop.f32.mrb[61].mxu0 }
 0x181   :  { %v644_v6 = vadd.f32 %v3206_v42, %v643_v5  ;;  %v2813_v7 = vpop.f32.mrb[62].mxu0  ;;  %2874 = vmatprep.mubr.msk.bf16.mxu1 %vm777_vm0, %v750_v2 }
 0x182   :  { %v655_v8 = vadd.f32 %v2813_v7, %v3206_v42  ;;  %v646_v9 = vpop.f32.mrb[63].mxu0  ;;  %2875 = vmatmul.mubr.msk.bf16.gmra.mrb[32].mxu1 %vm777_vm0, %v751_v1  ;;  %v720_v11 = vmax.f32 %v652_v4, 0.0 }
 0x183   :  { %v647_v10 = vadd.f32 %v3206_v42, %v646_v9  ;;  %v718_v13 = vmax.f32 %v644_v6, 0.0 }
 0x184   :  { %v721_v12 = vmax.f32 %v655_v8, 0.0 }
 0x185   :  { %v719_v14 = vmax.f32 %v647_v10, 0.0 }
 0x186   :  { %v753_v15 = vpack.c.bf16 %v721_v12, %v720_v11 }
 0x187   :  { %v752_v16 = vpack.c.bf16 %v719_v14, %v718_v13 }
 0x189   :  { %2878 = vmatprep.mubr.msk.bf16.mxu1 %vm777_vm0, %v752_v16 }
 0x18a   :  { %2879 = vmatmul.mubr.msk.bf16.gmra.mrb[36].mxu1 %vm777_vm0, %v753_v15 }
 0x1e5   :  { %v2820_v18 = vpop.f32.mrb[64].mxu0 }
 0x1e6   :  { %v917_v19 = vadd.f32 %v2820_v18, %v3317_v17  ;;  %v908_v20 = vpop.f32.mrb[65].mxu0 }
 0x1e7   :  { %v909_v42 = vadd.f32 %v3317_v17, %v908_v20  ;;  %v2821_v21 = vpop.f32.mrb[66].mxu0 }
 0x1e8   :  { %v920_v22 = vadd.f32 %v2821_v21, %v3317_v17  ;;  %v911_v23 = vpop.f32.mrb[67].mxu0  ;;  %v1165_v25 = vmax.f32 %v917_v19, 0.0 }
 0x1e9   :  { %v912_v24 = vadd.f32 %v3317_v17, %v911_v23  ;;  %v1163_v27 = vmax.f32 %v909_v42, 0.0 }
 0x1ea   :  { %v1166_v26 = vmax.f32 %v920_v22, 0.0 }
 0x1eb   :  { %v1164_v28 = vmax.f32 %v912_v24, 0.0 }
 0x1ec   :  { %v1228_v29 = vpack.c.bf16 %v1166_v26, %v1165_v25 }
 0x1ed   :  { %v1227_v30 = vpack.c.bf16 %v1164_v28, %v1163_v27  ;;  %v2824_v31 = vpop.f32.mrb[68].mxu0 }
 0x1ee   :  { %v933_v32 = vadd.f32 %v2824_v31, %v3317_v17  ;;  %v924_v33 = vpop.f32.mrb[69].mxu0 }
 0x1ef   :  { %v925_v34 = vadd.f32 %v3317_v17, %v924_v33  ;;  %v2825_v35 = vpop.f32.mrb[70].mxu0  ;;  %2886 = vmatprep.mubr.msk.bf16.mxu1 %vm777_vm0, %v1227_v30 }
 0x1f0   :  { %v936_v36 = vadd.f32 %v2825_v35, %v3317_v17  ;;  %v927_v50 = vpop.f32.mrb[71].mxu0  ;;  %2887 = vmatmul.mubr.msk.bf16.vlgmr.msra.gmra.mrb[40].mxu1 %vm777_vm0, %v1228_v29  ;;  %v1169_v38 = vmax.f32 %v933_v32, 0.0 }
 0x1f1   :  { %v928_v37 = vadd.f32 %v3317_v17, %v927_v50  ;;  %v1167_v40 = vmax.f32 %v925_v34, 0.0 }
 0x1f2   :  { %v1170_v39 = vmax.f32 %v936_v36, 0.0 }
 0x1f3   :  { %v1168_v41 = vmax.f32 %v928_v37, 0.0 }
 0x1f4   :  { %v1230_v43 = vpack.c.bf16 %v1170_v39, %v1169_v38 }
 0x1f5   :  { %v1229_v44 = vpack.c.bf16 %v1168_v41, %v1167_v40  ;;  %v2828_v45 = vpop.f32.mrb[72].mxu0 }
 0x1f6   :  { %v949_v46 = vadd.f32 %v2828_v45, %v3317_v17  ;;  %v940_v47 = vpop.f32.mrb[73].mxu0 }
 0x1f7   :  { %v941_v48 = vadd.f32 %v3317_v17, %v940_v47  ;;  %v2829_v49 = vpop.f32.mrb[74].mxu0  ;;  %2890 = vmatprep.mubr.msk.bf16.mxu1 %vm777_vm0, %v1229_v44 }
 0x1f8   :  { %v952_v51 = vadd.f32 %v2829_v49, %v3317_v17  ;;  %v943_v52 = vpop.f32.mrb[75].mxu0  ;;  %2891 = vmatmul.mubr.msk.bf16.gmra.mrb[44].mxu1 %vm777_vm0, %v1230_v43  ;;  %v1173_v54 = vmax.f32 %v949_v46, 0.0 }
 0x1f9   :  { %v944_v53 = vadd.f32 %v3317_v17, %v943_v52  ;;  %v1171_v56 = vmax.f32 %v941_v48, 0.0 }
 0x1fa   :  { %v1174_v55 = vmax.f32 %v952_v51, 0.0 }
 0x1fb   :  { %v1172_v57 = vmax.f32 %v944_v53, 0.0 }
 0x1fc   :  { %v1232_v58 = vpack.c.bf16 %v1174_v55, %v1173_v54 }
 0x1fd   :  { %v1231_v59 = vpack.c.bf16 %v1172_v57, %v1171_v56  ;;  %v2832_v60 = vpop.f32.mrb[76].mxu0 }
 0x1fe   :  { %v965_v61 = vadd.f32 %v2832_v60, %v3317_v17  ;;  %v956_v62 = vpop.f32.mrb[77].mxu0 }
 0x1ff   :  { %v957_v63 = vadd.f32 %v3317_v17, %v956_v62  ;;  %v2833_v0 = vpop.f32.mrb[78].mxu0  ;;  %2894 = vmatprep.mubr.msk.bf16.mxu1 %vm777_vm0, %v1231_v59 }
 0x200   :  { %v968_v1 = vadd.f32 %v2833_v0, %v3317_v17  ;;  %v959_v2 = vpop.f32.mrb[79].mxu0  ;;  %2895 = vmatmul.mubr.msk.bf16.gmra.mrb[48].mxu1 %vm777_vm0, %v1232_v58  ;;  %v1177_v4 = vmax.f32 %v965_v61, 0.0 }
 0x201   :  { %v960_v3 = vadd.f32 %v3317_v17, %v959_v2  ;;  %v1175_v6 = vmax.f32 %v957_v63, 0.0 }
 0x202   :  { %v1178_v5 = vmax.f32 %v968_v1, 0.0 }
 0x203   :  { %v1176_v7 = vmax.f32 %v960_v3, 0.0 }
 0x204   :  { %v1234_v8 = vpack.c.bf16 %v1178_v5, %v1177_v4 }
 0x205   :  { %v1233_v9 = vpack.c.bf16 %v1176_v7, %v1175_v6  ;;  %v2836_v10 = vpop.f32.mrb[80].mxu0 }
 0x206   :  { %v981_v11 = vadd.f32 %v2836_v10, %v3317_v17  ;;  %v972_v12 = vpop.f32.mrb[81].mxu0 }
 0x207   :  { %v973_v13 = vadd.f32 %v3317_v17, %v972_v12  ;;  %v2837_v14 = vpop.f32.mrb[82].mxu0  ;;  %2898 = vmatprep.mubr.msk.bf16.mxu1 %vm777_vm0, %v1233_v9 }
 0x208   :  { %v984_v15 = vadd.f32 %v2837_v14, %v3317_v17  ;;  %v975_v16 = vpop.f32.mrb[83].mxu0  ;;  %2899 = vmatmul.mubr.msk.bf16.gmra.mrb[52].mxu1 %vm777_vm0, %v1234_v8  ;;  %v1181_v19 = vmax.f32 %v981_v11, 0.0 }
 0x209   :  { %v976_v18 = vadd.f32 %v3317_v17, %v975_v16  ;;  %v1179_v42 = vmax.f32 %v973_v13, 0.0 }
 0x20a   :  { %v1182_v20 = vmax.f32 %v984_v15, 0.0 }
 0x20b   :  { %v1180_v21 = vmax.f32 %v976_v18, 0.0 }
 0x20c   :  { %v1236_v22 = vpack.c.bf16 %v1182_v20, %v1181_v19 }
 0x20d   :  { %v1235_v23 = vpack.c.bf16 %v1180_v21, %v1179_v42  ;;  %v2840_v24 = vpop.f32.mrb[84].mxu0 }
 0x20e   :  { %v997_v25 = vadd.f32 %v2840_v24, %v3317_v17  ;;  %v988_v26 = vpop.f32.mrb[85].mxu0 }
 0x20f   :  { %v989_v27 = vadd.f32 %v3317_v17, %v988_v26  ;;  %v2841_v28 = vpop.f32.mrb[86].mxu0  ;;  %2902 = vmatprep.mubr.msk.bf16.mxu1 %vm777_vm0, %v1235_v23 }
 0x210   :  { %v1000_v29 = vadd.f32 %v2841_v28, %v3317_v17  ;;  %v991_v30 = vpop.f32.mrb[87].mxu0  ;;  %2903 = vmatmul.mubr.msk.bf16.gmra.mrb[56].mxu1 %vm777_vm0, %v1236_v22  ;;  %v1185_v32 = vmax.f32 %v997_v25, 0.0 }
 0x211   :  { %v992_v31 = vadd.f32 %v3317_v17, %v991_v30  ;;  %v1183_v34 = vmax.f32 %v989_v27, 0.0 }
 0x212   :  { %v1186_v33 = vmax.f32 %v1000_v29, 0.0 }
 0x213   :  { %v1184_v35 = vmax.f32 %v992_v31, 0.0 }
 0x214   :  { %v1238_v36 = vpack.c.bf16 %v1186_v33, %v1185_v32 }
 0x215   :  { %v1237_v50 = vpack.c.bf16 %v1184_v35, %v1183_v34  ;;  %v2844_v37 = vpop.f32.mrb[0].mxu1 }
 0x216   :  { %v1013_v38 = vadd.f32 %v2844_v37, %v3317_v17  ;;  %v1004_v39 = vpop.f32.mrb[1].mxu1 }
 0x217   :  { %v1005_v40 = vadd.f32 %v3317_v17, %v1004_v39  ;;  %v2845_v41 = vpop.f32.mrb[2].mxu1  ;;  %2906 = vmatprep.mubr.msk.bf16.mxu1 %vm777_vm0, %v1237_v50 }
 0x218   :  { %v1016_v43 = vadd.f32 %v2845_v41, %v3317_v17  ;;  %v1007_v44 = vpop.f32.mrb[3].mxu1  ;;  %2907 = vmatmul.mubr.msk.bf16.gmra.mrb[60].mxu1 %vm777_vm0, %v1238_v36  ;;  %v1189_v46 = vmax.f32 %v1013_v38, 0.0 }
 0x219   :  { %v1008_v45 = vadd.f32 %v3317_v17, %v1007_v44  ;;  %v1187_v48 = vmax.f32 %v1005_v40, 0.0 }
 0x21a   :  { %v1190_v47 = vmax.f32 %v1016_v43, 0.0 }
 0x21b   :  { %v1188_v49 = vmax.f32 %v1008_v45, 0.0 }
 0x21c   :  { %v1240_v51 = vpack.c.bf16 %v1190_v47, %v1189_v46 }
 0x21d   :  { %v1239_v52 = vpack.c.bf16 %v1188_v49, %v1187_v48  ;;  %v2848_v53 = vpop.f32.mrb[4].mxu1 }
 0x21e   :  { %v1029_v54 = vadd.f32 %v2848_v53, %v3317_v17  ;;  %v1020_v55 = vpop.f32.mrb[5].mxu1 }
 0x21f   :  { %v1021_v56 = vadd.f32 %v3317_v17, %v1020_v55  ;;  %v2849_v57 = vpop.f32.mrb[6].mxu1  ;;  %2910 = vmatprep.mubr.msk.bf16.mxu1 %vm777_vm0, %v1239_v52 }
 0x220   :  { %v1032_v58 = vadd.f32 %v2849_v57, %v3317_v17  ;;  %v1023_v59 = vpop.f32.mrb[7].mxu1  ;;  %2911 = vmatmul.mubr.msk.bf16.gmra.mrb[64].mxu1 %vm777_vm0, %v1240_v51  ;;  %v1193_v61 = vmax.f32 %v1029_v54, 0.0 }
 0x221   :  { %v1024_v60 = vadd.f32 %v3317_v17, %v1023_v59  ;;  %v1191_v63 = vmax.f32 %v1021_v56, 0.0 }
 0x222   :  { %v1194_v62 = vmax.f32 %v1032_v58, 0.0 }
 0x223   :  { %v1192_v0 = vmax.f32 %v1024_v60, 0.0 }
 0x224   :  { %v1242_v1 = vpack.c.bf16 %v1194_v62, %v1193_v61 }
 0x225   :  { %v1241_v2 = vpack.c.bf16 %v1192_v0, %v1191_v63  ;;  %v2852_v3 = vpop.f32.mrb[8].mxu1 }
 0x226   :  { %v1045_v4 = vadd.f32 %v2852_v3, %v3317_v17  ;;  %v1036_v5 = vpop.f32.mrb[9].mxu1 }
 0x227   :  { %v1037_v6 = vadd.f32 %v3317_v17, %v1036_v5  ;;  %v2853_v7 = vpop.f32.mrb[10].mxu1  ;;  %2914 = vmatprep.mubr.msk.bf16.mxu1 %vm777_vm0, %v1241_v2 }
 0x228   :  { %v1048_v8 = vadd.f32 %v2853_v7, %v3317_v17  ;;  %v1039_v9 = vpop.f32.mrb[11].mxu1  ;;  %2915 = vmatmul.mubr.msk.bf16.gmra.mrb[68].mxu1 %vm777_vm0, %v1242_v1  ;;  %v1197_v11 = vmax.f32 %v1045_v4, 0.0 }
 0x229   :  { %v1040_v10 = vadd.f32 %v3317_v17, %v1039_v9  ;;  %v1195_v13 = vmax.f32 %v1037_v6, 0.0 }
 0x22a   :  { %v1198_v12 = vmax.f32 %v1048_v8, 0.0 }
 0x22b   :  { %v1196_v14 = vmax.f32 %v1040_v10, 0.0 }
 0x22c   :  { %v1244_v15 = vpack.c.bf16 %v1198_v12, %v1197_v11 }
 0x22d   :  { %v1243_v16 = vpack.c.bf16 %v1196_v14, %v1195_v13  ;;  %v2856_v18 = vpop.f32.mrb[12].mxu1 }
 0x22e   :  { %v1061_v19 = vadd.f32 %v2856_v18, %v3317_v17  ;;  %v1052_v20 = vpop.f32.mrb[13].mxu1 }
 0x22f   :  { %v1053_v42 = vadd.f32 %v3317_v17, %v1052_v20  ;;  %v2857_v21 = vpop.f32.mrb[14].mxu1  ;;  %2918 = vmatprep.mubr.msk.bf16.mxu1 %vm777_vm0, %v1243_v16 }
 0x230   :  { %v1064_v22 = vadd.f32 %v2857_v21, %v3317_v17  ;;  %v1055_v23 = vpop.f32.mrb[15].mxu1  ;;  %2919 = vmatmul.mubr.msk.bf16.gmra.mrb[72].mxu1 %vm777_vm0, %v1244_v15  ;;  %v1201_v25 = vmax.f32 %v1061_v19, 0.0 }
 0x231   :  { %v1056_v24 = vadd.f32 %v3317_v17, %v1055_v23  ;;  %v1199_v27 = vmax.f32 %v1053_v42, 0.0 }
 0x232   :  { %v1202_v26 = vmax.f32 %v1064_v22, 0.0 }
 0x233   :  { %v1200_v28 = vmax.f32 %v1056_v24, 0.0 }
 0x234   :  { %v1246_v29 = vpack.c.bf16 %v1202_v26, %v1201_v25 }
 0x235   :  { %v1245_v30 = vpack.c.bf16 %v1200_v28, %v1199_v27  ;;  %v2860_v31 = vpop.f32.mrb[16].mxu1 }
 0x236   :  { %v1077_v32 = vadd.f32 %v2860_v31, %v3317_v17  ;;  %v1068_v33 = vpop.f32.mrb[17].mxu1 }
 0x237   :  { %v1069_v34 = vadd.f32 %v3317_v17, %v1068_v33  ;;  %v2861_v35 = vpop.f32.mrb[18].mxu1  ;;  %2922 = vmatprep.mubr.msk.bf16.mxu1 %vm777_vm0, %v1245_v30 }
 0x238   :  { %v1080_v36 = vadd.f32 %v2861_v35, %v3317_v17  ;;  %v1071_v50 = vpop.f32.mrb[19].mxu1  ;;  %2923 = vmatmul.mubr.msk.bf16.gmra.mrb[76].mxu1 %vm777_vm0, %v1246_v29  ;;  %v1205_v38 = vmax.f32 %v1077_v32, 0.0 }
 0x239   :  { %v1072_v37 = vadd.f32 %v3317_v17, %v1071_v50  ;;  %v1203_v40 = vmax.f32 %v1069_v34, 0.0 }
 0x23a   :  { %v1206_v39 = vmax.f32 %v1080_v36, 0.0 }
 0x23b   :  { %v1204_v41 = vmax.f32 %v1072_v37, 0.0 }
 0x23c   :  { %v1248_v43 = vpack.c.bf16 %v1206_v39, %v1205_v38 }
 0x23d   :  { %v1247_v44 = vpack.c.bf16 %v1204_v41, %v1203_v40  ;;  %v2864_v45 = vpop.f32.mrb[20].mxu1 }
 0x23e   :  { %v1093_v46 = vadd.f32 %v2864_v45, %v3317_v17  ;;  %v1084_v47 = vpop.f32.mrb[21].mxu1 }
 0x23f   :  { %v1085_v48 = vadd.f32 %v3317_v17, %v1084_v47  ;;  %v2865_v49 = vpop.f32.mrb[22].mxu1  ;;  %2926 = vmatprep.mubr.msk.bf16.mxu1 %vm777_vm0, %v1247_v44 }
 0x240   :  { %v1096_v51 = vadd.f32 %v2865_v49, %v3317_v17  ;;  %v1087_v52 = vpop.f32.mrb[23].mxu1  ;;  %2927 = vmatmul.mubr.msk.bf16.gmra.mrb[80].mxu1 %vm777_vm0, %v1248_v43  ;;  %v1209_v54 = vmax.f32 %v1093_v46, 0.0 }
 0x241   :  { %v1088_v53 = vadd.f32 %v3317_v17, %v1087_v52  ;;  %v1207_v56 = vmax.f32 %v1085_v48, 0.0 }
 0x242   :  { %v1210_v55 = vmax.f32 %v1096_v51, 0.0 }
 0x243   :  { %v1208_v57 = vmax.f32 %v1088_v53, 0.0  ;;  %v3418_v53 = vld [vmem:[%s3505_s6] ss:$0 sm:$0xff]  ;;  %s3117_s6 = smov [#allocation5]  }
 0x244   :  { %v1250_v58 = vpack.c.bf16 %v1210_v55, %v1209_v54  ;;  %v3034_v54 = vld [vmem:[#allocation2 + $0x8] sm:$0xff]   ;;  %s2184_s18 = sshll.u32 %s3117_s6, 4  ;;  %s2185_s18 = int_to_ptr.vmem [resolvable:$true] %s2184_s18 }
 0x245   :  { %v1249_v59 = vpack.c.bf16 %v1208_v57, %v1207_v56  ;;  %v2868_v60 = vpop.f32.mrb[24].mxu1  ;;  %v1669_v55 = vunpack.c.l.bf16 %v3034_v54  ;;  %v3035_v56 = vld [vmem:[#allocation2] sm:$0xff]   ;;  %s3088_s19 = scalar_lea.vmem %s2185_s18, 4096  ;;  %p3093_p9 = scmp.lt.s32.totalorder %s2185_s18, %s2185_s18 }
 0x246   :  { %v1109_v61 = vadd.f32 %v2868_v60, %v3317_v17  ;;  %v1100_v62 = vpop.f32.mrb[25].mxu1  ;;  %v1667_v57 = vunpack.c.l.bf16 %v3035_v56  ;;  %v1670_v60 = vunpack.c.h.bf16 %v3034_v54  ;;  %p3089_p8 = scmp.ne.s32.totalorder %s2185_s18, %s3088_s19  ;;  %p3094_p10 = scmp.lt.s32.totalorder %s3088_s19, %s3088_s19 }
 0x247   :  { %v1101_v63 = vadd.f32 %v3317_v17, %v1100_v62  ;;  %v2869_v0 = vpop.f32.mrb[26].mxu1  ;;  %2930 = vmatprep.mubr.msk.bf16.mxu1 %vm777_vm0, %v1249_v59 }
 0x248   :  { %v1112_v1 = vadd.f32 %v2869_v0, %v3317_v17  ;;  %v1103_v2 = vpop.f32.mrb[27].mxu1  ;;  %2931 = vmatmul.mubr.msk.bf16.gmra.mrb[84].mxu1 %vm777_vm0, %v1250_v58  ;;  %v1213_v4 = vmax.f32 %v1109_v61, 0.0  ;;  %v1668_v61 = vunpack.c.h.bf16 %v3035_v56  ;;  %p3095_p11 = por %p3094_p10, %p3093_p9 }
 0x249   :  { %v1104_v3 = vadd.f32 %v3317_v17, %v1103_v2  ;;  %v1211_v6 = vmax.f32 %v1101_v63, 0.0 }
 0x24a   :  { %v1214_v5 = vmax.f32 %v1112_v1, 0.0  ;;  %p3096_p12 = pnand %p3095_p11, %p3089_p8 }
 0x24b   :  { %v1212_v7 = vmax.f32 %v1104_v3, 0.0 }
 0x24c   :  { %v1252_v8 = vpack.c.bf16 %v1214_v5, %v1213_v4 }
 0x24d   :  { %v1251_v9 = vpack.c.bf16 %v1212_v7, %v1211_v6  ;;  %v2872_v10 = vpop.f32.mrb[28].mxu1 }
 0x24e   :  { %v1125_v11 = vadd.f32 %v2872_v10, %v3317_v17  ;;  %v1116_v12 = vpop.f32.mrb[29].mxu1 }
 0x24f   :  { %v1117_v13 = vadd.f32 %v3317_v17, %v1116_v12  ;;  %v2873_v14 = vpop.f32.mrb[30].mxu1  ;;  %2934 = vmatprep.mubr.msk.bf16.mxu1 %vm777_vm0, %v1251_v9  ;;  %v3036_v9 = vld [vmem:[#allocation2 + $0x18] sm:$0xff]  }
 0x250   :  { %v1128_v15 = vadd.f32 %v2873_v14, %v3317_v17  ;;  %v1119_v16 = vpop.f32.mrb[31].mxu1  ;;  %2935 = vmatmul.mubr.msk.bf16.gmra.mrb[88].mxu1 %vm777_vm0, %v1252_v8  ;;  %v1217_v19 = vmax.f32 %v1125_v11, 0.0  ;;  %v1673_v10 = vunpack.c.l.bf16 %v3036_v9  ;;  %v3037_v14 = vld [vmem:[#allocation2 + $0x10] sm:$0xff]  }
 0x251   :  { %v1120_v18 = vadd.f32 %v3317_v17, %v1119_v16  ;;  %v1215_v42 = vmax.f32 %v1117_v13, 0.0 }
 0x252   :  { %v1218_v20 = vmax.f32 %v1128_v15, 0.0  ;;  %v1671_v15 = vunpack.c.l.bf16 %v3037_v14 }
 0x253   :  { %v1216_v21 = vmax.f32 %v1120_v18, 0.0 }
 0x254   :  { %v1254_v22 = vpack.c.bf16 %v1218_v20, %v1217_v19  ;;  %v1674_v20 = vunpack.c.h.bf16 %v3036_v9 }
 0x255   :  { %v1253_v23 = vpack.c.bf16 %v1216_v21, %v1215_v42  ;;  %v2876_v24 = vpop.f32.mrb[32].mxu1 }
 0x256   :  { %v1141_v25 = vadd.f32 %v2876_v24, %v3317_v17  ;;  %v1132_v26 = vpop.f32.mrb[33].mxu1 }
 0x257   :  { %v1133_v27 = vadd.f32 %v3317_v17, %v1132_v26  ;;  %v2877_v28 = vpop.f32.mrb[34].mxu1  ;;  %2938 = vmatprep.mubr.msk.bf16.mxu1 %vm777_vm0, %v1253_v23  ;;  %v1672_v23 = vunpack.c.h.bf16 %v3037_v14 }
 0x258   :  { %v1144_v29 = vadd.f32 %v2877_v28, %v3317_v17  ;;  %v1135_v30 = vpop.f32.mrb[35].mxu1  ;;  %2939 = vmatmul.mubr.msk.bf16.gmra.mrb[92].mxu1 %vm777_vm0, %v1254_v22  ;;  %v1221_v32 = vmax.f32 %v1141_v25, 0.0 }
 0x259   :  { %v1136_v31 = vadd.f32 %v3317_v17, %v1135_v30  ;;  %v1219_v34 = vmax.f32 %v1133_v27, 0.0 }
 0x25a   :  { %v1222_v33 = vmax.f32 %v1144_v29, 0.0 }
 0x25b   :  { %v1220_v35 = vmax.f32 %v1136_v31, 0.0 }
 0x25c   :  { %v1256_v36 = vpack.c.bf16 %v1222_v33, %v1221_v32  ;;  %v3038_v33 = vld [vmem:[#allocation2 + $0x28] sm:$0xff]  }
 0x25d   :  { %v1255_v50 = vpack.c.bf16 %v1220_v35, %v1219_v34  ;;  %v2880_v37 = vpop.f32.mrb[36].mxu1  ;;  %v1677_v34 = vunpack.c.l.bf16 %v3038_v33 }
 0x25e   :  { %v1157_v38 = vadd.f32 %v2880_v37, %v3317_v17  ;;  %v1148_v39 = vpop.f32.mrb[37].mxu1  ;;  %v3039_v37 = vld [vmem:[#allocation2 + $0x20] sm:$0xff]  }
 0x25f   :  { %v1149_v40 = vadd.f32 %v3317_v17, %v1148_v39  ;;  %v2881_v41 = vpop.f32.mrb[38].mxu1  ;;  %2942 = vmatprep.mubr.msk.bf16.mxu1 %vm777_vm0, %v1255_v50 }
 0x260   :  { %v1160_v43 = vadd.f32 %v2881_v41, %v3317_v17  ;;  %v1151_v44 = vpop.f32.mrb[39].mxu1  ;;  %2943 = vmatmul.mubr.msk.bf16.gmra.mrb[96].mxu1 %vm777_vm0, %v1256_v36  ;;  %v1225_v46 = vmax.f32 %v1157_v38, 0.0  ;;  %v1675_v38 = vunpack.c.l.bf16 %v3039_v37 }
 0x261   :  { %v1152_v45 = vadd.f32 %v3317_v17, %v1151_v44  ;;  %v1223_v48 = vmax.f32 %v1149_v40, 0.0 }
 0x262   :  { %v1226_v47 = vmax.f32 %v1160_v43, 0.0  ;;  %v1678_v43 = vunpack.c.h.bf16 %v3038_v33 }
 0x263   :  { %v1224_v49 = vmax.f32 %v1152_v45, 0.0 }
 0x264   :  { %v1258_v51 = vpack.c.bf16 %v1226_v47, %v1225_v46  ;;  %v1676_v47 = vunpack.c.h.bf16 %v3039_v37 }
 0x265   :  { %v1257_v52 = vpack.c.bf16 %v1224_v49, %v1223_v48 }
 0x267   :  { %2946 = vmatprep.mubr.msk.bf16.mxu1 %vm777_vm0, %v1257_v52 }
 0x268   :  { %2947 = vmatmul.mubr.msk.bf16.gmra.mrb[100].mxu1 %vm777_vm0, %v1258_v51 }
 0x2c3   :  { %v2888_v17 = vpop.f32.mrb[40].mxu1 }
 0x2c4   :  { %v1421_v58 = vadd.f32 %v2888_v17, %v3418_v53  ;;  %v1412_v59 = vpop.f32.mrb[41].mxu1 }
 0x2c5   :  { %v1413_v62 = vadd.f32 %v3418_v53, %v1412_v59  ;;  %v2889_v63 = vpop.f32.mrb[42].mxu1 }
 0x2c6   :  { %v1733_v0 = vadd.f32 %v1669_v55, %v1421_v58  ;;  %v1424_v1 = vadd.f32 %v2889_v63, %v3418_v53  ;;  %v1415_v2 = vpop.f32.mrb[43].mxu1  ;;  %v3040_v58 = vld [vmem:[#allocation2 + $0x38] sm:$0xff]   ;;  %v3041_v63 = vld [vmem:[#allocation2 + $0x30] sm:$0xff]  }
 0x2c7   :  { %v1731_v3 = vadd.f32 %v1667_v57, %v1413_v62  ;;  %v1416_v4 = vadd.f32 %v3418_v53, %v1415_v2  ;;  %v1681_v59 = vunpack.c.l.bf16 %v3040_v58 }
 0x2c8   :  { %v1734_v5 = vadd.f32 %v1670_v60, %v1424_v1  ;;  %v1797_v7 = vmax.f32 %v1733_v0, 0.0  ;;  %v1679_v0 = vunpack.c.l.bf16 %v3041_v63 }
 0x2c9   :  { %v1732_v6 = vadd.f32 %v1668_v61, %v1416_v4  ;;  %v1795_v11 = vmax.f32 %v1731_v3, 0.0  ;;  %v1682_v4 = vunpack.c.h.bf16 %v3040_v58 }
 0x2ca   :  { %v1798_v8 = vmax.f32 %v1734_v5, 0.0 }
 0x2cb   :  { %v1796_v12 = vmax.f32 %v1732_v6, 0.0  ;;  %v2892_v13 = vpop.f32.mrb[44].mxu1 }
 0x2cc   :  { %v2443_v16 = vpack.c.bf16 %v1798_v8, %v1797_v7  ;;  %v1437_v18 = vadd.f32 %v2892_v13, %v3418_v53  ;;  %v1428_v19 = vpop.f32.mrb[45].mxu1  ;;  %v1680_v8 = vunpack.c.h.bf16 %v3041_v63 }
 0x2cd   :  { %v2438_v42 = vpack.c.bf16 %v1796_v12, %v1795_v11  ;;  %v1429_v21 = vadd.f32 %v3418_v53, %v1428_v19  ;;  %v2893_v22 = vpop.f32.mrb[46].mxu1  ;;  %v3042_v19 = vld [vmem:[#allocation2 + $0x48] sm:$0xff]  }
 0x2ce   :  { %2595 = vst [vmem:[#allocation5 + $0x8] sm:$0xff] %v2443_v16   ;;  %v1737_v24 = vadd.f32 %v1673_v10, %v1437_v18  ;;  %v1440_v25 = vadd.f32 %v2893_v22, %v3418_v53  ;;  %v1431_v26 = vpop.f32.mrb[47].mxu1 }
 0x2cf   :  { %2439 = vst [vmem:[#allocation5] sm:$0xff] %v2438_v42   ;;  %v1735_v27 = vadd.f32 %v1671_v15, %v1429_v21  ;;  %v1432_v28 = vadd.f32 %v3418_v53, %v1431_v26 }
 0x2d0   :  { %v1738_v29 = vadd.f32 %v1674_v20, %v1440_v25  ;;  %v1801_v31 = vmax.f32 %v1737_v24, 0.0  ;;  %v1685_v20 = vunpack.c.l.bf16 %v3042_v19 }
 0x2d1   :  { %v1736_v30 = vadd.f32 %v1672_v23, %v1432_v28  ;;  %v1799_v35 = vmax.f32 %v1735_v27, 0.0  ;;  %v3043_v23 = vld [vmem:[#allocation2 + $0x40] sm:$0xff]   ;;  %v1686_v28 = vunpack.c.h.bf16 %v3042_v19 }
 0x2d2   :  { %v1802_v32 = vmax.f32 %v1738_v29, 0.0  ;;  %v1683_v24 = vunpack.c.l.bf16 %v3043_v23 }
 0x2d3   :  { %v1800_v36 = vmax.f32 %v1736_v30, 0.0  ;;  %v2896_v50 = vpop.f32.mrb[48].mxu1 }
 0x2d4   :  { %v2453_v39 = vpack.c.bf16 %v1802_v32, %v1801_v31  ;;  %v1453_v40 = vadd.f32 %v2896_v50, %v3418_v53  ;;  %v1444_v41 = vpop.f32.mrb[49].mxu1  ;;  %v1684_v32 = vunpack.c.h.bf16 %v3043_v23 }
 0x2d5   :  { %v2448_v44 = vpack.c.bf16 %v1800_v36, %v1799_v35  ;;  %v1445_v45 = vadd.f32 %v3418_v53, %v1444_v41  ;;  %v2897_v46 = vpop.f32.mrb[50].mxu1  ;;  %v3044_v41 = vld [vmem:[#allocation2 + $0x58] sm:$0xff]  }
 0x2d6   :  { %2597 = vst [vmem:[#allocation5 + $0x18] sm:$0xff] %v2453_v39   ;;  %v1741_v48 = vadd.f32 %v1677_v34, %v1453_v40  ;;  %v1456_v49 = vadd.f32 %v2897_v46, %v3418_v53  ;;  %v1447_v51 = vpop.f32.mrb[51].mxu1 }
 0x2d7   :  { %2596 = vst [vmem:[#allocation5 + $0x10] sm:$0xff] %v2448_v44   ;;  %v1739_v52 = vadd.f32 %v1675_v38, %v1445_v45  ;;  %v1448_v54 = vadd.f32 %v3418_v53, %v1447_v51 }
 0x2d8   :  { %v1742_v55 = vadd.f32 %v1678_v43, %v1456_v49  ;;  %v1805_v57 = vmax.f32 %v1741_v48, 0.0  ;;  %v1689_v43 = vunpack.c.l.bf16 %v3044_v41 }
 0x2d9   :  { %v1740_v56 = vadd.f32 %v1676_v47, %v1448_v54  ;;  %v1803_v60 = vmax.f32 %v1739_v52, 0.0  ;;  %v3045_v47 = vld [vmem:[#allocation2 + $0x50] sm:$0xff]   ;;  %v1690_v54 = vunpack.c.h.bf16 %v3044_v41 }
 0x2da   :  { %v1806_v17 = vmax.f32 %v1742_v55, 0.0  ;;  %v1687_v48 = vunpack.c.l.bf16 %v3045_v47 }
 0x2db   :  { %v1804_v61 = vmax.f32 %v1740_v56, 0.0  ;;  %v2900_v62 = vpop.f32.mrb[52].mxu1 }
 0x2dc   :  { %v2463_v1 = vpack.c.bf16 %v1806_v17, %v1805_v57  ;;  %v1469_v2 = vadd.f32 %v2900_v62, %v3418_v53  ;;  %v1460_v3 = vpop.f32.mrb[53].mxu1  ;;  %v1688_v17 = vunpack.c.h.bf16 %v3045_v47 }
 0x2dd   :  { %v2458_v5 = vpack.c.bf16 %v1804_v61, %v1803_v60  ;;  %v1461_v6 = vadd.f32 %v3418_v53, %v1460_v3  ;;  %v2901_v7 = vpop.f32.mrb[54].mxu1  ;;  %v3046_v3 = vld [vmem:[#allocation2 + $0x68] sm:$0xff]  }
 0x2de   :  { %2599 = vst [vmem:[#allocation5 + $0x28] sm:$0xff] %v2463_v1   ;;  %v1745_v9 = vadd.f32 %v1681_v59, %v1469_v2  ;;  %v1472_v10 = vadd.f32 %v2901_v7, %v3418_v53  ;;  %v1463_v11 = vpop.f32.mrb[55].mxu1 }
 0x2df   :  { %2598 = vst [vmem:[#allocation5 + $0x20] sm:$0xff] %v2458_v5   ;;  %v1743_v12 = vadd.f32 %v1679_v0, %v1461_v6  ;;  %v1464_v13 = vadd.f32 %v3418_v53, %v1463_v11 }
 0x2e0   :  { %v1746_v14 = vadd.f32 %v1682_v4, %v1472_v10  ;;  %v1809_v16 = vmax.f32 %v1745_v9, 0.0  ;;  %v1693_v4 = vunpack.c.l.bf16 %v3046_v3 }
 0x2e1   :  { %v1744_v15 = vadd.f32 %v1680_v8, %v1464_v13  ;;  %v1807_v42 = vmax.f32 %v1743_v12, 0.0  ;;  %v3047_v8 = vld [vmem:[#allocation2 + $0x60] sm:$0xff]   ;;  %v1694_v13 = vunpack.c.h.bf16 %v3046_v3 }
 0x2e2   :  { %v1810_v18 = vmax.f32 %v1746_v14, 0.0  ;;  %v1691_v9 = vunpack.c.l.bf16 %v3047_v8 }
 0x2e3   :  { %v1808_v21 = vmax.f32 %v1744_v15, 0.0  ;;  %v2904_v22 = vpop.f32.mrb[56].mxu1 }
 0x2e4   :  { %v2473_v25 = vpack.c.bf16 %v1810_v18, %v1809_v16  ;;  %v1485_v26 = vadd.f32 %v2904_v22, %v3418_v53  ;;  %v1476_v27 = vpop.f32.mrb[57].mxu1  ;;  %v1692_v18 = vunpack.c.h.bf16 %v3047_v8 }
 0x2e5   :  { %v2468_v29 = vpack.c.bf16 %v1808_v21, %v1807_v42  ;;  %v1477_v30 = vadd.f32 %v3418_v53, %v1476_v27  ;;  %v2905_v31 = vpop.f32.mrb[58].mxu1  ;;  %v3048_v27 = vld [vmem:[#allocation2 + $0x78] sm:$0xff]  }
 0x2e6   :  { %2601 = vst [vmem:[#allocation5 + $0x38] sm:$0xff] %v2473_v25   ;;  %v1749_v33 = vadd.f32 %v1685_v20, %v1485_v26  ;;  %v1488_v34 = vadd.f32 %v2905_v31, %v3418_v53  ;;  %v1479_v35 = vpop.f32.mrb[59].mxu1 }
 0x2e7   :  { %2600 = vst [vmem:[#allocation5 + $0x30] sm:$0xff] %v2468_v29   ;;  %v1747_v36 = vadd.f32 %v1683_v24, %v1477_v30  ;;  %v1480_v50 = vadd.f32 %v3418_v53, %v1479_v35 }
 0x2e8   :  { %v1750_v37 = vadd.f32 %v1686_v28, %v1488_v34  ;;  %v1813_v39 = vmax.f32 %v1749_v33, 0.0  ;;  %v1697_v28 = vunpack.c.l.bf16 %v3048_v27 }
 0x2e9   :  { %v1748_v38 = vadd.f32 %v1684_v32, %v1480_v50  ;;  %v1811_v44 = vmax.f32 %v1747_v36, 0.0  ;;  %v3049_v32 = vld [vmem:[#allocation2 + $0x70] sm:$0xff]   ;;  %v1698_v50 = vunpack.c.h.bf16 %v3048_v27 }
 0x2ea   :  { %v1814_v40 = vmax.f32 %v1750_v37, 0.0  ;;  %v1695_v33 = vunpack.c.l.bf16 %v3049_v32 }
 0x2eb   :  { %v1812_v45 = vmax.f32 %v1748_v38, 0.0  ;;  %v2908_v46 = vpop.f32.mrb[60].mxu1 }
 0x2ec   :  { %v2483_v49 = vpack.c.bf16 %v1814_v40, %v1813_v39  ;;  %v1501_v51 = vadd.f32 %v2908_v46, %v3418_v53  ;;  %v1492_v52 = vpop.f32.mrb[61].mxu1  ;;  %v1696_v40 = vunpack.c.h.bf16 %v3049_v32 }
 0x2ed   :  { %v2478_v55 = vpack.c.bf16 %v1812_v45, %v1811_v44  ;;  %v1493_v56 = vadd.f32 %v3418_v53, %v1492_v52  ;;  %v2909_v57 = vpop.f32.mrb[62].mxu1  ;;  %v3050_v52 = vld [vmem:[#allocation2 + $0x88] sm:$0xff]  }
 0x2ee   :  { %2603 = vst [vmem:[#allocation5 + $0x48] sm:$0xff] %v2483_v49   ;;  %v1753_v58 = vadd.f32 %v1689_v43, %v1501_v51  ;;  %v1504_v59 = vadd.f32 %v2909_v57, %v3418_v53  ;;  %v1495_v60 = vpop.f32.mrb[63].mxu1 }
 0x2ef   :  { %2602 = vst [vmem:[#allocation5 + $0x40] sm:$0xff] %v2478_v55   ;;  %v1751_v61 = vadd.f32 %v1687_v48, %v1493_v56  ;;  %v1496_v62 = vadd.f32 %v3418_v53, %v1495_v60 }
 0x2f0   :  { %v1754_v63 = vadd.f32 %v1690_v54, %v1504_v59  ;;  %v1817_v1 = vmax.f32 %v1753_v58, 0.0  ;;  %v1701_v54 = vunpack.c.l.bf16 %v3050_v52 }
 0x2f1   :  { %v1752_v0 = vadd.f32 %v1688_v17, %v1496_v62  ;;  %v1815_v5 = vmax.f32 %v1751_v61, 0.0  ;;  %v3051_v17 = vld [vmem:[#allocation2 + $0x80] sm:$0xff]   ;;  %v1702_v62 = vunpack.c.h.bf16 %v3050_v52 }
 0x2f2   :  { %v1818_v2 = vmax.f32 %v1754_v63, 0.0  ;;  %v1699_v58 = vunpack.c.l.bf16 %v3051_v17 }
 0x2f3   :  { %v1816_v6 = vmax.f32 %v1752_v0, 0.0  ;;  %v2912_v7 = vpop.f32.mrb[64].mxu1 }
 0x2f4   :  { %v2493_v10 = vpack.c.bf16 %v1818_v2, %v1817_v1  ;;  %v1517_v11 = vadd.f32 %v2912_v7, %v3418_v53  ;;  %v1508_v12 = vpop.f32.mrb[65].mxu1  ;;  %v1700_v2 = vunpack.c.h.bf16 %v3051_v17 }
 0x2f5   :  { %v2488_v14 = vpack.c.bf16 %v1816_v6, %v1815_v5  ;;  %v1509_v15 = vadd.f32 %v3418_v53, %v1508_v12  ;;  %v2913_v16 = vpop.f32.mrb[66].mxu1  ;;  %v3052_v12 = vld [vmem:[#allocation2 + $0x98] sm:$0xff]  }
 0x2f6   :  { %2605 = vst [vmem:[#allocation5 + $0x58] sm:$0xff] %v2493_v10   ;;  %v1757_v19 = vadd.f32 %v1693_v4, %v1517_v11  ;;  %v1520_v20 = vadd.f32 %v2913_v16, %v3418_v53  ;;  %v1511_v42 = vpop.f32.mrb[67].mxu1 }
 0x2f7   :  { %2604 = vst [vmem:[#allocation5 + $0x50] sm:$0xff] %v2488_v14   ;;  %v1755_v21 = vadd.f32 %v1691_v9, %v1509_v15  ;;  %v1512_v22 = vadd.f32 %v3418_v53, %v1511_v42 }
 0x2f8   :  { %v1758_v23 = vadd.f32 %v1694_v13, %v1520_v20  ;;  %v1821_v25 = vmax.f32 %v1757_v19, 0.0  ;;  %v1705_v13 = vunpack.c.l.bf16 %v3052_v12 }
 0x2f9   :  { %v1756_v24 = vadd.f32 %v1692_v18, %v1512_v22  ;;  %v1819_v29 = vmax.f32 %v1755_v21, 0.0  ;;  %v3053_v18 = vld [vmem:[#allocation2 + $0x90] sm:$0xff]   ;;  %v1706_v22 = vunpack.c.h.bf16 %v3052_v12 }
 0x2fa   :  { %v1822_v26 = vmax.f32 %v1758_v23, 0.0  ;;  %v1703_v19 = vunpack.c.l.bf16 %v3053_v18 }
 0x2fb   :  { %v1820_v30 = vmax.f32 %v1756_v24, 0.0  ;;  %v2916_v31 = vpop.f32.mrb[68].mxu1 }
 0x2fc   :  { %v2503_v34 = vpack.c.bf16 %v1822_v26, %v1821_v25  ;;  %v1533_v35 = vadd.f32 %v2916_v31, %v3418_v53  ;;  %v1524_v36 = vpop.f32.mrb[69].mxu1  ;;  %v1704_v26 = vunpack.c.h.bf16 %v3053_v18 }
 0x2fd   :  { %v2498_v37 = vpack.c.bf16 %v1820_v30, %v1819_v29  ;;  %v1525_v38 = vadd.f32 %v3418_v53, %v1524_v36  ;;  %v2917_v39 = vpop.f32.mrb[70].mxu1  ;;  %v3054_v36 = vld [vmem:[#allocation2 + $0xa8] sm:$0xff]  }
 0x2fe   :  { %2607 = vst [vmem:[#allocation5 + $0x68] sm:$0xff] %v2503_v34   ;;  %v1761_v41 = vadd.f32 %v1697_v28, %v1533_v35  ;;  %v1536_v43 = vadd.f32 %v2917_v39, %v3418_v53  ;;  %v1527_v44 = vpop.f32.mrb[71].mxu1 }
 0x2ff   :  { %2606 = vst [vmem:[#allocation5 + $0x60] sm:$0xff] %v2498_v37   ;;  %v1759_v45 = vadd.f32 %v1695_v33, %v1525_v38  ;;  %v1528_v46 = vadd.f32 %v3418_v53, %v1527_v44 }
 0x300   :  { %v1762_v47 = vadd.f32 %v1698_v50, %v1536_v43  ;;  %v1825_v49 = vmax.f32 %v1761_v41, 0.0  ;;  %v1709_v50 = vunpack.c.l.bf16 %v3054_v36 }
 0x301   :  { %v1760_v48 = vadd.f32 %v1696_v40, %v1528_v46  ;;  %v1823_v55 = vmax.f32 %v1759_v45, 0.0  ;;  %v3055_v40 = vld [vmem:[#allocation2 + $0xa0] sm:$0xff]   ;;  %v1710_v46 = vunpack.c.h.bf16 %v3054_v36 }
 0x302   :  { %v1826_v51 = vmax.f32 %v1762_v47, 0.0  ;;  %v1707_v41 = vunpack.c.l.bf16 %v3055_v40 }
 0x303   :  { %v1824_v56 = vmax.f32 %v1760_v48, 0.0  ;;  %v2920_v57 = vpop.f32.mrb[72].mxu1 }
 0x304   :  { %v2513_v59 = vpack.c.bf16 %v1826_v51, %v1825_v49  ;;  %v1549_v60 = vadd.f32 %v2920_v57, %v3418_v53  ;;  %v1540_v61 = vpop.f32.mrb[73].mxu1  ;;  %v1708_v51 = vunpack.c.h.bf16 %v3055_v40 }
 0x305   :  { %v2508_v63 = vpack.c.bf16 %v1824_v56, %v1823_v55  ;;  %v1541_v0 = vadd.f32 %v3418_v53, %v1540_v61  ;;  %v2921_v1 = vpop.f32.mrb[74].mxu1  ;;  %v3056_v61 = vld [vmem:[#allocation2 + $0xb8] sm:$0xff]  }
 0x306   :  { %2609 = vst [vmem:[#allocation5 + $0x78] sm:$0xff] %v2513_v59   ;;  %v1765_v3 = vadd.f32 %v1701_v54, %v1549_v60  ;;  %v1552_v4 = vadd.f32 %v2921_v1, %v3418_v53  ;;  %v1543_v5 = vpop.f32.mrb[75].mxu1 }
 0x307   :  { %2608 = vst [vmem:[#allocation5 + $0x70] sm:$0xff] %v2508_v63   ;;  %v1763_v6 = vadd.f32 %v1699_v58, %v1541_v0  ;;  %v1544_v7 = vadd.f32 %v3418_v53, %v1543_v5 }
 0x308   :  { %v1766_v8 = vadd.f32 %v1702_v62, %v1552_v4  ;;  %v1829_v10 = vmax.f32 %v1765_v3, 0.0  ;;  %v1713_v62 = vunpack.c.l.bf16 %v3056_v61 }
 0x309   :  { %v1764_v9 = vadd.f32 %v1700_v2, %v1544_v7  ;;  %v1827_v14 = vmax.f32 %v1763_v6, 0.0  ;;  %v3057_v2 = vld [vmem:[#allocation2 + $0xb0] sm:$0xff]   ;;  %v1714_v7 = vunpack.c.h.bf16 %v3056_v61 }
 0x30a   :  { %v1830_v11 = vmax.f32 %v1766_v8, 0.0  ;;  %v1711_v3 = vunpack.c.l.bf16 %v3057_v2 }
 0x30b   :  { %v1828_v15 = vmax.f32 %v1764_v9, 0.0  ;;  %v2924_v16 = vpop.f32.mrb[76].mxu1 }
 0x30c   :  { %v2523_v20 = vpack.c.bf16 %v1830_v11, %v1829_v10  ;;  %v1565_v42 = vadd.f32 %v2924_v16, %v3418_v53  ;;  %v1556_v21 = vpop.f32.mrb[77].mxu1  ;;  %v1712_v11 = vunpack.c.h.bf16 %v3057_v2 }
 0x30d   :  { %v2518_v23 = vpack.c.bf16 %v1828_v15, %v1827_v14  ;;  %v1557_v24 = vadd.f32 %v3418_v53, %v1556_v21  ;;  %v2925_v25 = vpop.f32.mrb[78].mxu1  ;;  %v3058_v21 = vld [vmem:[#allocation2 + $0xc8] sm:$0xff]  }
 0x30e   :  { %2611 = vst [vmem:[#allocation5 + $0x88] sm:$0xff] %v2523_v20   ;;  %v1769_v27 = vadd.f32 %v1705_v13, %v1565_v42  ;;  %v1568_v28 = vadd.f32 %v2925_v25, %v3418_v53  ;;  %v1559_v29 = vpop.f32.mrb[79].mxu1 }
 0x30f   :  { %2610 = vst [vmem:[#allocation5 + $0x80] sm:$0xff] %v2518_v23   ;;  %v1767_v30 = vadd.f32 %v1703_v19, %v1557_v24  ;;  %v1560_v31 = vadd.f32 %v3418_v53, %v1559_v29 }
 0x310   :  { %v1770_v32 = vadd.f32 %v1706_v22, %v1568_v28  ;;  %v1833_v34 = vmax.f32 %v1769_v27, 0.0  ;;  %v1717_v22 = vunpack.c.l.bf16 %v3058_v21 }
 0x311   :  { %v1768_v33 = vadd.f32 %v1704_v26, %v1560_v31  ;;  %v1831_v37 = vmax.f32 %v1767_v30, 0.0  ;;  %v3059_v26 = vld [vmem:[#allocation2 + $0xc0] sm:$0xff]   ;;  %v1718_v31 = vunpack.c.h.bf16 %v3058_v21 }
 0x312   :  { %v1834_v35 = vmax.f32 %v1770_v32, 0.0  ;;  %v1715_v27 = vunpack.c.l.bf16 %v3059_v26 }
 0x313   :  { %v1832_v38 = vmax.f32 %v1768_v33, 0.0  ;;  %v2928_v39 = vpop.f32.mrb[80].mxu1 }
 0x314   :  { %v2533_v43 = vpack.c.bf16 %v1834_v35, %v1833_v34  ;;  %v1581_v44 = vadd.f32 %v2928_v39, %v3418_v53  ;;  %v1572_v45 = vpop.f32.mrb[81].mxu1  ;;  %v1716_v35 = vunpack.c.h.bf16 %v3059_v26 }
 0x315   :  { %v2528_v47 = vpack.c.bf16 %v1832_v38, %v1831_v37  ;;  %v1573_v48 = vadd.f32 %v3418_v53, %v1572_v45  ;;  %v2929_v49 = vpop.f32.mrb[82].mxu1  ;;  %v3060_v45 = vld [vmem:[#allocation2 + $0xd8] sm:$0xff]  }
 0x316   :  { %2613 = vst [vmem:[#allocation5 + $0x98] sm:$0xff] %v2533_v43   ;;  %v1773_v52 = vadd.f32 %v1709_v50, %v1581_v44  ;;  %v1584_v54 = vadd.f32 %v2929_v49, %v3418_v53  ;;  %v1575_v55 = vpop.f32.mrb[83].mxu1 }
 0x317   :  { %2612 = vst [vmem:[#allocation5 + $0x90] sm:$0xff] %v2528_v47   ;;  %v1771_v56 = vadd.f32 %v1707_v41, %v1573_v48  ;;  %v1576_v57 = vadd.f32 %v3418_v53, %v1575_v55 }
 0x318   :  { %v1774_v17 = vadd.f32 %v1710_v46, %v1584_v54  ;;  %v1837_v59 = vmax.f32 %v1773_v52, 0.0  ;;  %v1721_v46 = vunpack.c.l.bf16 %v3060_v45 }
 0x319   :  { %v1772_v58 = vadd.f32 %v1708_v51, %v1576_v57  ;;  %v1835_v63 = vmax.f32 %v1771_v56, 0.0  ;;  %v3061_v51 = vld [vmem:[#allocation2 + $0xd0] sm:$0xff]   ;;  %v1722_v57 = vunpack.c.h.bf16 %v3060_v45 }
 0x31a   :  { %v1838_v60 = vmax.f32 %v1774_v17, 0.0  ;;  %v1719_v52 = vunpack.c.l.bf16 %v3061_v51 }
 0x31b   :  { %v1836_v0 = vmax.f32 %v1772_v58, 0.0  ;;  %v2932_v1 = vpop.f32.mrb[84].mxu1 }
 0x31c   :  { %v2543_v4 = vpack.c.bf16 %v1838_v60, %v1837_v59  ;;  %v1597_v5 = vadd.f32 %v2932_v1, %v3418_v53  ;;  %v1588_v6 = vpop.f32.mrb[85].mxu1  ;;  %v1720_v60 = vunpack.c.h.bf16 %v3061_v51 }
 0x31d   :  { %v2538_v8 = vpack.c.bf16 %v1836_v0, %v1835_v63  ;;  %v1589_v9 = vadd.f32 %v3418_v53, %v1588_v6  ;;  %v2933_v10 = vpop.f32.mrb[86].mxu1  ;;  %v3062_v6 = vld [vmem:[#allocation2 + $0xe8] sm:$0xff]  }
 0x31e   :  { %2615 = vst [vmem:[#allocation5 + $0xa8] sm:$0xff] %v2543_v4   ;;  %v1777_v12 = vadd.f32 %v1713_v62, %v1597_v5  ;;  %v1600_v13 = vadd.f32 %v2933_v10, %v3418_v53  ;;  %v1591_v14 = vpop.f32.mrb[87].mxu1 }
 0x31f   :  { %2614 = vst [vmem:[#allocation5 + $0xa0] sm:$0xff] %v2538_v8   ;;  %v1775_v15 = vadd.f32 %v1711_v3, %v1589_v9  ;;  %v1592_v16 = vadd.f32 %v3418_v53, %v1591_v14 }
 0x320   :  { %v1778_v18 = vadd.f32 %v1714_v7, %v1600_v13  ;;  %v1841_v20 = vmax.f32 %v1777_v12, 0.0  ;;  %v1725_v7 = vunpack.c.l.bf16 %v3062_v6 }
 0x321   :  { %v1776_v19 = vadd.f32 %v1712_v11, %v1592_v16  ;;  %v1839_v23 = vmax.f32 %v1775_v15, 0.0  ;;  %v3063_v11 = vld [vmem:[#allocation2 + $0xe0] sm:$0xff]   ;;  %v1726_v16 = vunpack.c.h.bf16 %v3062_v6 }
 0x322   :  { %v1842_v42 = vmax.f32 %v1778_v18, 0.0  ;;  %v1723_v12 = vunpack.c.l.bf16 %v3063_v11 }
 0x323   :  { %v1840_v24 = vmax.f32 %v1776_v19, 0.0  ;;  %v2936_v25 = vpop.f32.mrb[88].mxu1 }
 0x324   :  { %v2553_v28 = vpack.c.bf16 %v1842_v42, %v1841_v20  ;;  %v1613_v29 = vadd.f32 %v2936_v25, %v3418_v53  ;;  %v1604_v30 = vpop.f32.mrb[89].mxu1  ;;  %v1724_v42 = vunpack.c.h.bf16 %v3063_v11 }
 0x325   :  { %v2548_v32 = vpack.c.bf16 %v1840_v24, %v1839_v23  ;;  %v1605_v33 = vadd.f32 %v3418_v53, %v1604_v30  ;;  %v2937_v34 = vpop.f32.mrb[90].mxu1  ;;  %v3064_v30 = vld [vmem:[#allocation2 + $0xf8] sm:$0xff]  }
 0x326   :  { %2617 = vst [vmem:[#allocation5 + $0xb8] sm:$0xff] %v2553_v28   ;;  %v1781_v36 = vadd.f32 %v1717_v22, %v1613_v29  ;;  %v1616_v50 = vadd.f32 %v2937_v34, %v3418_v53  ;;  %v1607_v37 = vpop.f32.mrb[91].mxu1 }
 0x327   :  { %2616 = vst [vmem:[#allocation5 + $0xb0] sm:$0xff] %v2548_v32   ;;  %v1779_v38 = vadd.f32 %v1715_v27, %v1605_v33  ;;  %v1608_v39 = vadd.f32 %v3418_v53, %v1607_v37 }
 0x328   :  { %v1782_v40 = vadd.f32 %v1718_v31, %v1616_v50  ;;  %v1845_v43 = vmax.f32 %v1781_v36, 0.0  ;;  %v1729_v31 = vunpack.c.l.bf16 %v3064_v30 }
 0x329   :  { %v1780_v41 = vadd.f32 %v1716_v35, %v1608_v39  ;;  %v1843_v47 = vmax.f32 %v1779_v38, 0.0  ;;  %v3065_v35 = vld [vmem:[#allocation2 + $0xf0] sm:$0xff]   ;;  %v1730_v39 = vunpack.c.h.bf16 %v3064_v30 }
 0x32a   :  { %v1846_v44 = vmax.f32 %v1782_v40, 0.0  ;;  %v1727_v36 = vunpack.c.l.bf16 %v3065_v35 }
 0x32b   :  { %v1844_v48 = vmax.f32 %v1780_v41, 0.0  ;;  %v2940_v49 = vpop.f32.mrb[92].mxu1 }
 0x32c   :  { %v2563_v54 = vpack.c.bf16 %v1846_v44, %v1845_v43  ;;  %v1629_v55 = vadd.f32 %v2940_v49, %v3418_v53  ;;  %v1620_v56 = vpop.f32.mrb[93].mxu1  ;;  %v1728_v44 = vunpack.c.h.bf16 %v3065_v35 }
 0x32d   :  { %v2558_v17 = vpack.c.bf16 %v1844_v48, %v1843_v47  ;;  %v1621_v58 = vadd.f32 %v3418_v53, %v1620_v56  ;;  %v2941_v59 = vpop.f32.mrb[94].mxu1 }
 0x32e   :  { %2619 = vst [vmem:[#allocation5 + $0xc8] sm:$0xff] %v2563_v54   ;;  %v1785_v61 = vadd.f32 %v1721_v46, %v1629_v55  ;;  %v1632_v62 = vadd.f32 %v2941_v59, %v3418_v53  ;;  %v1623_v63 = vpop.f32.mrb[95].mxu1 }
 0x32f   :  { %2618 = vst [vmem:[#allocation5 + $0xc0] sm:$0xff] %v2558_v17   ;;  %v1783_v0 = vadd.f32 %v1719_v52, %v1621_v58  ;;  %v1624_v1 = vadd.f32 %v3418_v53, %v1623_v63 }
 0x330   :  { %v1786_v2 = vadd.f32 %v1722_v57, %v1632_v62  ;;  %v1849_v4 = vmax.f32 %v1785_v61, 0.0 }
 0x331   :  { %v1784_v3 = vadd.f32 %v1720_v60, %v1624_v1  ;;  %v1847_v8 = vmax.f32 %v1783_v0, 0.0 }
 0x332   :  { %v1850_v5 = vmax.f32 %v1786_v2, 0.0 }
 0x333   :  { %v1848_v9 = vmax.f32 %v1784_v3, 0.0  ;;  %v2944_v10 = vpop.f32.mrb[96].mxu1 }
 0x334   :  { %v2573_v13 = vpack.c.bf16 %v1850_v5, %v1849_v4  ;;  %v1645_v14 = vadd.f32 %v2944_v10, %v3418_v53  ;;  %v1636_v15 = vpop.f32.mrb[97].mxu1 }
 0x335   :  { %v2568_v18 = vpack.c.bf16 %v1848_v9, %v1847_v8  ;;  %v1637_v19 = vadd.f32 %v3418_v53, %v1636_v15  ;;  %v2945_v20 = vpop.f32.mrb[98].mxu1 }
 0x336   :  { %2621 = vst [vmem:[#allocation5 + $0xd8] sm:$0xff] %v2573_v13   ;;  %v1789_v21 = vadd.f32 %v1725_v7, %v1645_v14  ;;  %v1648_v22 = vadd.f32 %v2945_v20, %v3418_v53  ;;  %v1639_v23 = vpop.f32.mrb[99].mxu1 }
 0x337   :  { %2620 = vst [vmem:[#allocation5 + $0xd0] sm:$0xff] %v2568_v18   ;;  %v1787_v24 = vadd.f32 %v1723_v12, %v1637_v19  ;;  %v1640_v25 = vadd.f32 %v3418_v53, %v1639_v23 }
 0x338   :  { %v1790_v26 = vadd.f32 %v1726_v16, %v1648_v22  ;;  %v1853_v28 = vmax.f32 %v1789_v21, 0.0 }
 0x339   :  { %v1788_v27 = vadd.f32 %v1724_v42, %v1640_v25  ;;  %v1851_v32 = vmax.f32 %v1787_v24, 0.0 }
 0x33a   :  { %v1854_v29 = vmax.f32 %v1790_v26, 0.0 }
 0x33b   :  { %v1852_v33 = vmax.f32 %v1788_v27, 0.0  ;;  %v2948_v34 = vpop.f32.mrb[100].mxu1 }
 0x33c   :  { %v2583_v50 = vpack.c.bf16 %v1854_v29, %v1853_v28  ;;  %v1661_v37 = vadd.f32 %v2948_v34, %v3418_v53  ;;  %v1652_v38 = vpop.f32.mrb[101].mxu1 }
 0x33d   :  { %v2578_v40 = vpack.c.bf16 %v1852_v33, %v1851_v32  ;;  %v1653_v41 = vadd.f32 %v3418_v53, %v1652_v38  ;;  %v2949_v43 = vpop.f32.mrb[102].mxu1 }
 0x33e   :  { %2623 = vst [vmem:[#allocation5 + $0xe8] sm:$0xff] %v2583_v50   ;;  %v1793_v45 = vadd.f32 %v1729_v31, %v1661_v37  ;;  %v1664_v46 = vadd.f32 %v2949_v43, %v3418_v53  ;;  %v1655_v47 = vpop.f32.mrb[103].mxu1 }
 0x33f   :  { %2622 = vst [vmem:[#allocation5 + $0xe0] sm:$0xff] %v2578_v40   ;;  %v1791_v48 = vadd.f32 %v1727_v36, %v1653_v41  ;;  %v1656_v49 = vadd.f32 %v3418_v53, %v1655_v47 }
 0x340   :  { %v1794_v51 = vadd.f32 %v1730_v39, %v1664_v46  ;;  %v1857_v54 = vmax.f32 %v1793_v45, 0.0 }
 0x341   :  { %v1792_v52 = vadd.f32 %v1728_v44, %v1656_v49  ;;  %v1855_v56 = vmax.f32 %v1791_v48, 0.0 }
 0x342   :  { %v1858_v55 = vmax.f32 %v1794_v51, 0.0 }
 0x343   :  { %v1856_v57 = vmax.f32 %v1792_v52, 0.0 }
 0x344   :  { %v2593_v17 = vpack.c.bf16 %v1858_v55, %v1857_v54 }
 0x345   :  { %v2588_v58 = vpack.c.bf16 %v1856_v57, %v1855_v56 }
 0x346   :  { %2625 = vst [vmem:[#allocation5 + $0xf8] sm:$0xff] %v2593_v17  }
 0x347   :  { %2624 = vst [vmem:[#allocation5 + $0xf0] sm:$0xff] %v2588_v58  }
 0x348   :  { %3099 = shalt.err (!%p3096_p12)
}
 0x349   :  { %s3100_s21 = scalar_lea.hbm %s3506_s7, 4096 }
 0x34a   :  { %p3101_p13 = scmp.ne.s32.totalorder %s3506_s7, %s3100_s21  ;;  %p3104_p0 = scmp.lt.u32.totalorder %s3100_s21, %s3506_s7 }
 0x34c   :  { %p3106_p1 = pnand %p3104_p0, %p3101_p13 }
 0x34e   :  { %3109 = shalt.err (!%p3106_p1)
}
 0x34f   :  { %2190 = dma.vmem_to_hbm [thread:$0]  %s2185_s18, 4096, %s3506_s7, [#allocation4], %s3115_s11, %s3115_s11, %s3116_s12  }
 0x350   :  { %3112 = dma.done.wait [#allocation4], 4096  }
 0x351   :  { %3113 = vsyncadd [#allocation4], 4294963200 }
 0x352   :  { %2194 = vsyncpa [#allocation3], 1 }
 0x353   :  { %2195 = vsyncpa [#allocation4], 1 }

</bundles_post_ra>
